<compile_context>
chip_gen: v7x
topology: tpu7x:2x2x1
jax: 0.10.0
libtpu: 0.0.40
codegen_flags: <defaults>
</compile_context>

<pallas_src>
import jax
import jax.numpy as jnp
from jax.experimental import pallas as pl
from jax.experimental.pallas import tpu as pltpu


# --------------------------------------------------------------------------- #
# Kernels
# --------------------------------------------------------------------------- #
def _pointwise_conv_kernel(x_ref, w_ref, b_ref, o_ref):
    """1x1 Conv1d: o[b, :, t0:t0+TT] = W @ x[b, :, t0:t0+TT] + b.

    x_ref: (1, Cin, TT)   w_ref: (Cout, Cin)   b_ref: (Cout, 1)   o_ref: (1, Cout, TT)
    """
    y = jnp.dot(w_ref[...], x_ref[0], preferred_element_type=jnp.float32)
    y = y + b_ref[...]
    o_ref[0] = y.astype(o_ref.dtype)


def _output_proj_center_kernel(h_ref, w_ref, b_ref, o_ref):
    """Output 1x1 conv fused with time-mean centering.

    h_ref: (1, Ch, TT)    w_ref: (Cd, Ch)    b_ref: (Cd, 1)
    o_ref: (1, Cd, T)  -- same block for every time tile of a batch element
                          (VMEM-resident accumulator across the "arbitrary" t axis).
    """
    t = pl.program_id(1)
    tt = h_ref.shape[-1]          # static tile width (multiple of 128 or full T)

    y = jnp.dot(w_ref[...], h_ref[0], preferred_element_type=jnp.float32)
    y = y + b_ref[...]

    start = pl.multiple_of(t * tt, tt)
    o_ref[0, :, pl.ds(start, tt)] = y.astype(o_ref.dtype)

    @pl.when(t == pl.num_programs(1) - 1)
    def _():
        full = o_ref[0].astype(jnp.float32)                 # (Cd, T)
        inv_t = 1.0 / full.shape[-1]                        # Python-time constant
        mu = jnp.sum(full, axis=-1, keepdims=True) * inv_t  # sum * (1/T), not mean
        o_ref[0] = (full - mu).astype(o_ref.dtype)


# --------------------------------------------------------------------------- #
# Wrapper
# --------------------------------------------------------------------------- #
def _pick_time_tile(total_t, max_tile):
    """Largest multiple of 128 <= max_tile that divides total_t; else full extent."""
    if total_t % 128 != 0:
        return total_t
    tile = max(128, (min(max_tile, total_t) // 128) * 128)
    while total_t % tile != 0:
        tile -= 128
    return tile


def content_encoder_forward(x, params, *, time_tile=1024):
    """x: (B, n_fft//2+1, T) f32 -> (B, content_dim, T) f32."""
    w_in, b_in = params["w_in"], params["b_in"]
    w_out, b_out = params["w_out"], params["b_out"]

    B, cin, T = x.shape
    ch, cin_w = w_in.shape
    cd, _ = w_out.shape
    assert cin_w == cin

    tt = _pick_time_tile(T, time_tile)
    n_t = T // tt

    b_in2 = b_in.reshape(ch, 1)
    b_out2 = b_out.reshape(cd, 1)

    # 1) input_layer: Conv1d(cin -> 512, kernel=1), tiled over time.
    h = pl.pallas_call(
        _pointwise_conv_kernel,
        out_shape=jax.ShapeDtypeStruct((B, ch, T), x.dtype),
        grid_spec=pltpu.PrefetchScalarGridSpec(
            num_scalar_prefetch=0,
            grid=(B, n_t),
            in_specs=[
                pl.BlockSpec((1, cin, tt), lambda b, t: (b, 0, t)),
                pl.BlockSpec((ch, cin), lambda b, t: (0, 0)),
                pl.BlockSpec((ch, 1), lambda b, t: (0, 0)),
            ],
            out_specs=pl.BlockSpec((1, ch, tt), lambda b, t: (b, 0, t)),
        ),
        compiler_params=pltpu.CompilerParams(
            dimension_semantics=("parallel", "parallel")),
    )(x, w_in, b_in2)

    # 2) mid_layers
    # TODO(synk): ConvNeXt1d is referenced but not defined in the provided spec; mid_layers are applied as identity here.

    # 3) output_layer + time-mean centering, fused in one kernel.
    out = pl.pallas_call(
        _output_proj_center_kernel,
        out_shape=jax.ShapeDtypeStruct((B, cd, T), x.dtype),
        grid_spec=pltpu.PrefetchScalarGridSpec(
            num_scalar_prefetch=0,
            grid=(B, n_t),
            in_specs=[
                pl.BlockSpec((1, ch, tt), lambda b, t: (b, 0, t)),
                pl.BlockSpec((cd, ch), lambda b, t: (0, 0)),
                pl.BlockSpec((cd, 1), lambda b, t: (0, 0)),
            ],
            out_specs=pl.BlockSpec((1, cd, T), lambda b, t: (b, 0, 0)),
        ),
        compiler_params=pltpu.CompilerParams(
            dimension_semantics=("parallel", "arbitrary")),
    )(h, w_out, b_out2)

    return out


# --------------------------------------------------------------------------- #
# Reference & self-test
# --------------------------------------------------------------------------- #
def _reference_forward(x, params):
    h = jnp.einsum("oc,bct->bot", params["w_in"], x) + params["b_in"][None, :, None]
    y = jnp.einsum("oc,bct->bot", params["w_out"], h) + params["b_out"][None, :, None]
    mu = jnp.mean(y, axis=2, keepdims=True)
    return y - mu


if __name__ == "__main__":
    key = jax.random.PRNGKey(0)
    kx, kw1, kb1, kw2, kb2 = jax.random.split(key, 5)

    # Shapes implied by the module defaults: n_fft=1024 -> 513 input bins,
    # 512 hidden channels, content_dim=4. Small time axis for the demo.
    B, T = 2, 256
    n_fft = 1024
    cin = n_fft // 2 + 1        # 513
    ch = 512
    cd = 4

    x = jax.random.normal(kx, (B, cin, T), dtype=jnp.float32)
    params = {
        "w_in": 0.05 * jax.random.normal(kw1, (ch, cin), dtype=jnp.float32),
        "b_in": 0.05 * jax.random.normal(kb1, (ch,), dtype=jnp.float32),
        "w_out": 0.05 * jax.random.normal(kw2, (cd, ch), dtype=jnp.float32),
        "b_out": 0.05 * jax.random.normal(kb2, (cd,), dtype=jnp.float32),
    }

    # Small time_tile so the demo exercises the multi-tile (tiled lane axis) path.
    out = content_encoder_forward(x, params, time_tile=128)
    out = jax.block_until_ready(out)

    ref = _reference_forward(x, params)
    assert out.shape == (B, cd, T), out.shape
    max_err = float(jnp.max(jnp.abs(out - ref)))
    assert jnp.allclose(out, ref, atol=3e-2, rtol=3e-2), f"mismatch vs reference, max_err={max_err}"

    print("KERNEL_OK")
</pallas_src>

<mosaic_0001>
module attributes {stable_mosaic.version = 11 : i64} {
  func.func @_pointwise_conv_kernel(%arg0: i32, %arg1: i32, %arg2: memref<1x513x128xf32, #tpu.memory_space<vmem>>, %arg3: memref<512x513xf32, #tpu.memory_space<vmem>>, %arg4: memref<512x1xf32, #tpu.memory_space<vmem>>, %arg5: memref<1x512x128xf32, #tpu.memory_space<vmem>>) attributes {dimension_semantics = [#tpu.dimension_semantics<parallel>, #tpu.dimension_semantics<parallel>], iteration_bounds = array<i64: 2, 2>, scalar_prefetch = 0 : i64, scratch_operands = 0 : i64, tpu.core_type = #tpu.core_type<tc>, window_params = [{transform_indices = @transform_0, window_bounds = array<i64: 1, 513, 128>}, {pipeline_mode = #tpu.pipeline_mode<synchronous>, transform_indices = @transform_1, window_bounds = array<i64: 512, 513>}, {pipeline_mode = #tpu.pipeline_mode<synchronous>, transform_indices = @transform_2, window_bounds = array<i64: 512, 1>}, {transform_indices = @transform_3, window_bounds = array<i64: 1, 512, 128>}]} {
    %c0 = arith.constant 0 : index
    %c0_0 = arith.constant 0 : index
    %0 = vector.load %arg3[%c0, %c0_0] : memref<512x513xf32, #tpu.memory_space<vmem>>, vector<512x513xf32>
    %c0_1 = arith.constant 0 : index
    %c0_2 = arith.constant 0 : index
    %c0_3 = arith.constant 0 : index
    %1 = vector.load %arg2[%c0_1, %c0_2, %c0_3] : memref<1x513x128xf32, #tpu.memory_space<vmem>>, vector<1x513x128xf32>
    %2 = vector.shape_cast %1 : vector<1x513x128xf32> to vector<513x128xf32>
    %cst = arith.constant dense<0.000000e+00> : vector<512x128xf32>
    %3 = tpu.matmul %0, %2, %cst {dimension_numbers = #tpu.dot_dimension_numbers<[1], [0], [0], [1], [0, 0, 1, 1], [], []>} : vector<512x513xf32>, vector<513x128xf32>, vector<512x128xf32> -> vector<512x128xf32>
    %c0_4 = arith.constant 0 : index
    %c0_5 = arith.constant 0 : index
    %4 = vector.load %arg4[%c0_4, %c0_5] : memref<512x1xf32, #tpu.memory_space<vmem>>, vector<512x1xf32>
    %5 = vector.broadcast %4 : vector<512x1xf32> to vector<512x128xf32>
    %6 = arith.addf %3, %5 : vector<512x128xf32>
    %c0_6 = arith.constant 0 : index
    %c0_7 = arith.constant 0 : index
    %c0_8 = arith.constant 0 : index
    %7 = vector.load %arg5[%c0_6, %c0_7, %c0_8] : memref<1x512x128xf32, #tpu.memory_space<vmem>>, vector<1x512x128xf32>
    %8 = vector.shape_cast %7 : vector<1x512x128xf32> to vector<512x128xf32>
    %9 = vector.shape_cast %6 : vector<512x128xf32> to vector<1x512x128xf32>
    tpu.vector_store %arg5[%c0_6, %c0_7, %c0_8], %9 {strides = array<i32>} : memref<1x512x128xf32, #tpu.memory_space<vmem>>, vector<1x512x128xf32>,
    return
  }
  func.func @transform_0(%arg0: i32, %arg1: i32) -> (i32, i32, i32) {
    %c0_i32 = arith.constant 0 : i32
    %c0_i32_0 = arith.constant 0 : i32
    return %arg0, %c0_i32, %arg1 : i32, i32, i32
  }
  func.func @transform_1(%arg0: i32, %arg1: i32) -> (i32, i32) {
    %c0_i32 = arith.constant 0 : i32
    %c0_i32_0 = arith.constant 0 : i32
    %c0_i32_1 = arith.constant 0 : i32
    return %c0_i32, %c0_i32_0 : i32, i32
  }
  func.func @transform_2(%arg0: i32, %arg1: i32) -> (i32, i32) {
    %c0_i32 = arith.constant 0 : i32
    %c0_i32_0 = arith.constant 0 : i32
    %c0_i32_1 = arith.constant 0 : i32
    return %c0_i32, %c0_i32_0 : i32, i32
  }
  func.func @transform_3(%arg0: i32, %arg1: i32) -> (i32, i32, i32) {
    %c0_i32 = arith.constant 0 : i32
    %c0_i32_0 = arith.constant 0 : i32
    return %arg0, %c0_i32, %arg1 : i32, i32, i32
  }
}

</mosaic_0001>

<bundles_post_ra>
// kernel: tpu_custom_call.1
= control target key start
LH: loop header
LB: loop body
LE: loop exit
PB: predicated region body
PF: predicated region fallthrough
CT: control target
= control target key end

     0   :  { %8 = vsyncpa [#allocation4], 0  ;;  %s5511_s0 = inlined_call_operand.vmem [shape: f32[2,513,256], index: 0, kind: input, shape index: {}]   ;;  %s5512_s1 = inlined_call_operand.vmem [shape: f32[512,513], index: 1, kind: input, shape index: {}]   ;;  %s5513_s2 = inlined_call_operand.vmem [shape: f32[512,1], index: 2, kind: input, shape index: {}]   ;;  %s5514_s3 = inlined_call_operand.hbm [shape: f32[2,512,256], index: 3, kind: output, shape index: {}]  }
   0x1   :  { %10 = vsyncpa [#allocation4 + $0x1], 0  ;;  %s3475_s12 = smov 0   ;;  %s3477_s13 = smov 0  }
   0x2   :  { %s3479_s14 = smov 0   ;;  %s3481_s15 = smov 0  }
   0x3   :  { %s3483_s16 = smov 0   ;;  %s3485_s17 = smov 0  }
   0x4   :  { %s3487_s18 = smov 0   ;;  %s3489_s19 = smov 0  }
   0x5 LB: > { %s2760_s20 = sadd.s32 4294967295, %s3447_s19   ;;  %s2761_s21 = sadd.s32 4294967294, %s3447_s19   ;;  %s3447_s19 = sphi %s3489_s19, %s16_s19   ;;  %s3443_s18 = sphi %s3487_s18, %s5586_s18   ;;  %s3439_s17 = sphi %s3485_s17, %s5585_s17   ;;  %s3435_s16 = sphi %s3483_s16, %s5584_s16   ;;  %s3431_s15 = sphi %s3481_s15, %s5583_s15   ;;  %s3427_s14 = sphi %s3479_s14, %s5582_s14   ;;  %s3423_s13 = sphi %s3477_s13, %s5581_s13   ;;  %s3419_s12 = sphi %s3475_s12, %s5580_s12  }
   0x6   : > { %s25_s22 = sadd.s32 1, %s3439_s17  ;;  %s28_s23 = sadd.s32 1, %s3443_s18 }
   0x7   : > { %p26_p0 = scmp.ge.s32.totalorder %s25_s22, 2  ;;  %p44_p1 = scmp.ne.s32.totalorder %s3427_s14, %s3423_s13 }
   0x8   : > { %p45_p2 = scmp.eq.s32.totalorder %s3447_s19, 0  ;;  %p118_p5 = scmp.eq.s32.totalorder %s2760_s20, 3 }
   0x9   : > { %s5588_s22 = smov (%p26_p0, %s25_s22), 0  ;;  %s5590_s23 = smov (!%p26_p0, %s28_s23), %s3443_s18 }
   0xa   : > { %s33_s24 = ssub.s32 %s3439_s17, %s5588_s22  ;;  %p3527_p3 = por %p45_p2, %p44_p1 }
   0xb   : > { %p30_p4 = scmp.ge.s32.totalorder %s5590_s23, 2  ;;  %p123_p6 = scmp.ne.s32.totalorder %s3423_s13, %s3419_s12 }
   0xc   : > { %p124_p7 = scmp.eq.s32.totalorder %s2761_s21, 3  ;;  %p3535_p8 = por %p118_p5, %p44_p1 }
   0xd   : > { %s5592_s23 = smov (%p30_p4, %s5590_s23), 0  ;;  %s37_s30 = sadd.s32 1, %s3427_s14 }
   0xe   : > { %p3539_p9 = por %p124_p7, %p123_p6  ;;  %s32_s28 = ssub.s32 %s3443_s18, %s5592_s23 }
   0xf   : > { %s34_s29 = sor.u32 %s33_s24, %s32_s28  ;;  %p2763_p11 = scmp.ge.s32.totalorder %s3447_s19, 4 }
  0x10   : > { %p35_p10 = scmp.eq.s32.totalorder %s34_s29, 0 }
  0x11   : > { %146 = sbr.rel (%p2763_p11) target bundleno = 64 (0x40), region = 24 }
  0x12   : > { %s3547_s4 = scalar_select %p35_p10, %s3427_s14, %s37_s30  }
  0x18   : > { %149 = sbr.rel (!%p3527_p3) target bundleno = 64 (0x40), region = 28  ;;  %s151_s5 = sand.u32 (%p3527_p3), 1, %s3427_s14  }
  0x19   : > { %s3273_s6 = smul.u32 (%p3527_p3), 130, %s3443_s18 }
  0x1a   : > { %s3272_s7 = smul.u32 (%p3527_p3), 520, %s151_s5 }
  0x1b   : > { %s155_s8 = sadd.s32 (%p3527_p3), %s3439_s17, %s3273_s6 }
  0x1c   : > { %s2764_s9 = sshll.u32 (%p3527_p3), %s155_s8, 3  ;;  %s3563_s21 = scalar_lea.vmem (%p3527_p3), [#allocation2], %s3272_s7 }
  0x1d   : > { %s3558_s20 = scalar_lea.vmem (%p3527_p3), %s5511_s0, %s2764_s9 }
  0x1e   : > { %v313_v0 = vld [vmem:[%s3558_s20] sm:$0xff] (%p3527_p3)  ;;  %v315_v1 = vld [vmem:[%s3558_s20 + $0x10] sm:$0xff] (%p3527_p3) }
  0x1f   : > { %v317_v2 = vld [vmem:[%s3558_s20 + $0x20] sm:$0xff]  ;;  %314 = vst [vmem:[%s3563_s21] sm:$0xff] %v313_v0  ;;  %316 = vst [vmem:[%s3563_s21 + $0x8] sm:$0xff] %v315_v1  ;;  %v319_v3 = vld [vmem:[%s3558_s20 + $0x30] sm:$0xff] }
  0x20   : > { %318 = vst [vmem:[%s3563_s21 + $0x10] sm:$0xff] %v317_v2  ;;  %v321_v4 = vld [vmem:[%s3558_s20 + $0x40] sm:$0xff]  ;;  %v323_v5 = vld [vmem:[%s3558_s20 + $0x50] sm:$0xff]  ;;  %320 = vst [vmem:[%s3563_s21 + $0x18] sm:$0xff] %v319_v3 }
  0x21   : > { %322 = vst [vmem:[%s3563_s21 + $0x20] sm:$0xff] %v321_v4  ;;  %324 = vst [vmem:[%s3563_s21 + $0x28] sm:$0xff] %v323_v5  ;;  %v325_v6 = vld [vmem:[%s3558_s20 + $0x60] sm:$0xff]  ;;  %v327_v7 = vld [vmem:[%s3558_s20 + $0x70] sm:$0xff] }
  0x22   : > { %v329_v8 = vld [vmem:[%s3558_s20 + $0x80] sm:$0xff]  ;;  %326 = vst [vmem:[%s3563_s21 + $0x30] sm:$0xff] %v325_v6  ;;  %328 = vst [vmem:[%s3563_s21 + $0x38] sm:$0xff] %v327_v7  ;;  %v331_v9 = vld [vmem:[%s3558_s20 + $0x90] sm:$0xff] }
  0x23   : > { %330 = vst [vmem:[%s3563_s21 + $0x40] sm:$0xff] %v329_v8  ;;  %v333_v10 = vld [vmem:[%s3558_s20 + $0xa0] sm:$0xff]  ;;  %v335_v11 = vld [vmem:[%s3558_s20 + $0xb0] sm:$0xff]  ;;  %332 = vst [vmem:[%s3563_s21 + $0x48] sm:$0xff] %v331_v9 }
  0x24   : > { %334 = vst [vmem:[%s3563_s21 + $0x50] sm:$0xff] %v333_v10  ;;  %336 = vst [vmem:[%s3563_s21 + $0x58] sm:$0xff] %v335_v11  ;;  %v337_v12 = vld [vmem:[%s3558_s20 + $0xc0] sm:$0xff]  ;;  %v339_v13 = vld [vmem:[%s3558_s20 + $0xd0] sm:$0xff] }
  0x25   : > { %v341_v14 = vld [vmem:[%s3558_s20 + $0xe0] sm:$0xff]  ;;  %338 = vst [vmem:[%s3563_s21 + $0x60] sm:$0xff] %v337_v12  ;;  %340 = vst [vmem:[%s3563_s21 + $0x68] sm:$0xff] %v339_v13  ;;  %v343_v15 = vld [vmem:[%s3558_s20 + $0xf0] sm:$0xff] }
  0x26   : > { %342 = vst [vmem:[%s3563_s21 + $0x70] sm:$0xff] %v341_v14  ;;  %v345_v16 = vld [vmem:[%s3558_s20 + $0x100] sm:$0xff]  ;;  %v347_v17 = vld [vmem:[%s3558_s20 + $0x110] sm:$0xff]  ;;  %344 = vst [vmem:[%s3563_s21 + $0x78] sm:$0xff] %v343_v15 }
  0x27   : > { %346 = vst [vmem:[%s3563_s21 + $0x80] sm:$0xff] %v345_v16  ;;  %348 = vst [vmem:[%s3563_s21 + $0x88] sm:$0xff] %v347_v17  ;;  %v349_v18 = vld [vmem:[%s3558_s20 + $0x120] sm:$0xff]  ;;  %v351_v19 = vld [vmem:[%s3558_s20 + $0x130] sm:$0xff] }
  0x28   : > { %v353_v20 = vld [vmem:[%s3558_s20 + $0x140] sm:$0xff]  ;;  %350 = vst [vmem:[%s3563_s21 + $0x90] sm:$0xff] %v349_v18  ;;  %352 = vst [vmem:[%s3563_s21 + $0x98] sm:$0xff] %v351_v19  ;;  %v355_v21 = vld [vmem:[%s3558_s20 + $0x150] sm:$0xff] }
  0x29   : > { %354 = vst [vmem:[%s3563_s21 + $0xa0] sm:$0xff] %v353_v20  ;;  %v357_v22 = vld [vmem:[%s3558_s20 + $0x160] sm:$0xff]  ;;  %v359_v23 = vld [vmem:[%s3558_s20 + $0x170] sm:$0xff]  ;;  %356 = vst [vmem:[%s3563_s21 + $0xa8] sm:$0xff] %v355_v21 }
  0x2a   : > { %358 = vst [vmem:[%s3563_s21 + $0xb0] sm:$0xff] %v357_v22  ;;  %360 = vst [vmem:[%s3563_s21 + $0xb8] sm:$0xff] %v359_v23  ;;  %v361_v24 = vld [vmem:[%s3558_s20 + $0x180] sm:$0xff]  ;;  %v363_v25 = vld [vmem:[%s3558_s20 + $0x190] sm:$0xff] }
  0x2b   : > { %v365_v26 = vld [vmem:[%s3558_s20 + $0x1a0] sm:$0xff]  ;;  %362 = vst [vmem:[%s3563_s21 + $0xc0] sm:$0xff] %v361_v24  ;;  %364 = vst [vmem:[%s3563_s21 + $0xc8] sm:$0xff] %v363_v25  ;;  %v367_v27 = vld [vmem:[%s3558_s20 + $0x1b0] sm:$0xff] }
  0x2c   : > { %366 = vst [vmem:[%s3563_s21 + $0xd0] sm:$0xff] %v365_v26  ;;  %v369_v28 = vld [vmem:[%s3558_s20 + $0x1c0] sm:$0xff]  ;;  %v371_v29 = vld [vmem:[%s3558_s20 + $0x1d0] sm:$0xff]  ;;  %368 = vst [vmem:[%s3563_s21 + $0xd8] sm:$0xff] %v367_v27 }
  0x2d   : > { %370 = vst [vmem:[%s3563_s21 + $0xe0] sm:$0xff] %v369_v28  ;;  %372 = vst [vmem:[%s3563_s21 + $0xe8] sm:$0xff] %v371_v29  ;;  %v373_v30 = vld [vmem:[%s3558_s20 + $0x1e0] sm:$0xff]  ;;  %v375_v31 = vld [vmem:[%s3558_s20 + $0x1f0] sm:$0xff] }
  0x2e   : > { %v377_v32 = vld [vmem:[%s3558_s20 + $0x200] sm:$0xff]  ;;  %374 = vst [vmem:[%s3563_s21 + $0xf0] sm:$0xff] %v373_v30  ;;  %376 = vst [vmem:[%s3563_s21 + $0xf8] sm:$0xff] %v375_v31  ;;  %v379_v33 = vld [vmem:[%s3558_s20 + $0x210] sm:$0xff] }
  0x2f   : > { %378 = vst [vmem:[%s3563_s21 + $0x100] sm:$0xff] %v377_v32  ;;  %v381_v34 = vld [vmem:[%s3558_s20 + $0x220] sm:$0xff]  ;;  %v383_v35 = vld [vmem:[%s3558_s20 + $0x230] sm:$0xff]  ;;  %380 = vst [vmem:[%s3563_s21 + $0x108] sm:$0xff] %v379_v33 }
  0x30   : > { %382 = vst [vmem:[%s3563_s21 + $0x110] sm:$0xff] %v381_v34  ;;  %384 = vst [vmem:[%s3563_s21 + $0x118] sm:$0xff] %v383_v35  ;;  %v385_v36 = vld [vmem:[%s3558_s20 + $0x240] sm:$0xff]  ;;  %v387_v37 = vld [vmem:[%s3558_s20 + $0x250] sm:$0xff] }
  0x31   : > { %v389_v38 = vld [vmem:[%s3558_s20 + $0x260] sm:$0xff]  ;;  %386 = vst [vmem:[%s3563_s21 + $0x120] sm:$0xff] %v385_v36  ;;  %388 = vst [vmem:[%s3563_s21 + $0x128] sm:$0xff] %v387_v37  ;;  %v391_v39 = vld [vmem:[%s3558_s20 + $0x270] sm:$0xff] }
  0x32   : > { %390 = vst [vmem:[%s3563_s21 + $0x130] sm:$0xff] %v389_v38  ;;  %v393_v40 = vld [vmem:[%s3558_s20 + $0x280] sm:$0xff]  ;;  %v395_v41 = vld [vmem:[%s3558_s20 + $0x290] sm:$0xff]  ;;  %392 = vst [vmem:[%s3563_s21 + $0x138] sm:$0xff] %v391_v39 }
  0x33   : > { %394 = vst [vmem:[%s3563_s21 + $0x140] sm:$0xff] %v393_v40  ;;  %396 = vst [vmem:[%s3563_s21 + $0x148] sm:$0xff] %v395_v41  ;;  %v397_v42 = vld [vmem:[%s3558_s20 + $0x2a0] sm:$0xff]  ;;  %v399_v43 = vld [vmem:[%s3558_s20 + $0x2b0] sm:$0xff] }
  0x34   : > { %v401_v44 = vld [vmem:[%s3558_s20 + $0x2c0] sm:$0xff]  ;;  %398 = vst [vmem:[%s3563_s21 + $0x150] sm:$0xff] %v397_v42  ;;  %400 = vst [vmem:[%s3563_s21 + $0x158] sm:$0xff] %v399_v43  ;;  %v403_v45 = vld [vmem:[%s3558_s20 + $0x2d0] sm:$0xff] }
  0x35   : > { %402 = vst [vmem:[%s3563_s21 + $0x160] sm:$0xff] %v401_v44  ;;  %v405_v46 = vld [vmem:[%s3558_s20 + $0x2e0] sm:$0xff]  ;;  %v407_v47 = vld [vmem:[%s3558_s20 + $0x2f0] sm:$0xff]  ;;  %404 = vst [vmem:[%s3563_s21 + $0x168] sm:$0xff] %v403_v45 }
  0x36   : > { %406 = vst [vmem:[%s3563_s21 + $0x170] sm:$0xff] %v405_v46  ;;  %408 = vst [vmem:[%s3563_s21 + $0x178] sm:$0xff] %v407_v47  ;;  %v409_v48 = vld [vmem:[%s3558_s20 + $0x300] sm:$0xff]  ;;  %v411_v49 = vld [vmem:[%s3558_s20 + $0x310] sm:$0xff] }
  0x37   : > { %v413_v50 = vld [vmem:[%s3558_s20 + $0x320] sm:$0xff]  ;;  %410 = vst [vmem:[%s3563_s21 + $0x180] sm:$0xff] %v409_v48  ;;  %412 = vst [vmem:[%s3563_s21 + $0x188] sm:$0xff] %v411_v49  ;;  %v415_v51 = vld [vmem:[%s3558_s20 + $0x330] sm:$0xff] }
  0x38   : > { %414 = vst [vmem:[%s3563_s21 + $0x190] sm:$0xff] %v413_v50  ;;  %v417_v52 = vld [vmem:[%s3558_s20 + $0x340] sm:$0xff]  ;;  %v419_v53 = vld [vmem:[%s3558_s20 + $0x350] sm:$0xff]  ;;  %416 = vst [vmem:[%s3563_s21 + $0x198] sm:$0xff] %v415_v51 }
  0x39   : > { %418 = vst [vmem:[%s3563_s21 + $0x1a0] sm:$0xff] %v417_v52  ;;  %420 = vst [vmem:[%s3563_s21 + $0x1a8] sm:$0xff] %v419_v53  ;;  %v421_v54 = vld [vmem:[%s3558_s20 + $0x360] sm:$0xff]  ;;  %v423_v55 = vld [vmem:[%s3558_s20 + $0x370] sm:$0xff] }
  0x3a   : > { %v425_v56 = vld [vmem:[%s3558_s20 + $0x380] sm:$0xff]  ;;  %422 = vst [vmem:[%s3563_s21 + $0x1b0] sm:$0xff] %v421_v54  ;;  %424 = vst [vmem:[%s3563_s21 + $0x1b8] sm:$0xff] %v423_v55  ;;  %v427_v57 = vld [vmem:[%s3558_s20 + $0x390] sm:$0xff] }
  0x3b   : > { %426 = vst [vmem:[%s3563_s21 + $0x1c0] sm:$0xff] %v425_v56  ;;  %v429_v58 = vld [vmem:[%s3558_s20 + $0x3a0] sm:$0xff]  ;;  %v431_v59 = vld [vmem:[%s3558_s20 + $0x3b0] sm:$0xff]  ;;  %428 = vst [vmem:[%s3563_s21 + $0x1c8] sm:$0xff] %v427_v57 }
  0x3c   : > { %430 = vst [vmem:[%s3563_s21 + $0x1d0] sm:$0xff] %v429_v58  ;;  %432 = vst [vmem:[%s3563_s21 + $0x1d8] sm:$0xff] %v431_v59  ;;  %v433_v60 = vld [vmem:[%s3558_s20 + $0x3c0] sm:$0xff]  ;;  %v435_v61 = vld [vmem:[%s3558_s20 + $0x3d0] sm:$0xff] }
  0x3d   : > { %v437_v62 = vld [vmem:[%s3558_s20 + $0x3e0] sm:$0xff]  ;;  %434 = vst [vmem:[%s3563_s21 + $0x1e0] sm:$0xff] %v433_v60  ;;  %436 = vst [vmem:[%s3563_s21 + $0x1e8] sm:$0xff] %v435_v61  ;;  %v439_v63 = vld [vmem:[%s3558_s20 + $0x3f0] sm:$0xff] }
  0x3e   : > { %438 = vst [vmem:[%s3563_s21 + $0x1f0] sm:$0xff] %v437_v62  ;;  %v441_v0 = vld [vmem:[%s3558_s20 + $0x400] sm:$0xff]  ;;  %440 = vst [vmem:[%s3563_s21 + $0x1f8] sm:$0xff] %v439_v63 }
  0x3f   : > { %442 = vst [vmem:[%s3563_s21 + $0x200] sm:$0xff] %v441_v0 }
  0x40 PF: > { %p2765_p12 = scmp.ge.s32.totalorder %s3447_s19, 1  ;;  %p447_p13 = scmp.lt.s32.totalorder %s3447_s19, 5 }
  0x42   : > { %p448_p0 = pnand %p2765_p12, %p447_p13 }
  0x44   : > { %451 = sbr.rel (%p448_p0) target bundleno = 693 (0x2b5), region = 66 }
  0x4b   : > { %s3695_s24 = sand.u32 1, %s3423_s13   ;;  %v478_v1 = vld [vmem:[%s5512_s1 + $0x8] sm:$0xff]  ;;  %v3449_v3 = vmov 0.0|0.0   ;;  %v3450_v4 = vmov 0   ;;  %v862_v35 = vld [vmem:[%s5513_s2] sm:$0xff]  ;;  %v864_v38 = vld [vmem:[%s5513_s2 + $0x10] sm:$0xff] }
  0x4c   : > { %v558_v2 = vld [vmem:[%s5512_s1 + $0x288] sm:$0xff]  ;;  %3000 = vmatprep.subr.bf16.mxu0 %v3449_v3  ;;  %3096 = vmatprep.subr.bf16.mxu1 %v3449_v3  ;;  %s3274_s5 = smul.u32 520, %s3695_s24  ;;  %v865_v43 = vld [vmem:[%s5513_s2 + $0x18] sm:$0xff]  ;;  %v866_v44 = vld [vmem:[%s5513_s2 + $0x20] sm:$0xff]  ;;  %vm1439_vm0 = vcmask 1040384   ;;  %vm1246_vm1 = vcmask 7168  }
  0x4d   : > { %1507 = vmatprep.mubr.f32.mxu0 %v478_v1  ;;  %1587 = vmatprep.mubr.f32.mxu1 %v558_v2  ;;  %v863_v39 = vld [vmem:[%s5513_s2 + $0x8] sm:$0xff]  ;;  %v868_v49 = vld [vmem:[%s5513_s2 + $0x30] sm:$0xff]  ;;  %v869_v51 = vld [vmem:[%s5513_s2 + $0x38] sm:$0xff]  ;;  %s2766_s8 = sshll.u32 %s3695_s24, 9  ;;  %s2833_s10 = sshll.u32 %s3435_s16, 7 }
  0x4e   : > { %3351 = vset.pattern.permute.xlu0 %v3450_v4  ;;  %3352 = vset.pattern.permute.xlu1 %v3450_v4  ;;  %s3706_s6 = scalar_lea.vmem [#allocation2], %s3274_s5  ;;  %v867_v46 = vld [vmem:[%s5513_s2 + $0x28] sm:$0xff]  ;;  %v870_v54 = vld [vmem:[%s5513_s2 + $0x40] sm:$0xff]  ;;  %v872_v59 = vld [vmem:[%s5513_s2 + $0x50] sm:$0xff]  ;;  %s5250_s9 = scalar_lea.vmem [#allocation3], %s2766_s8 }
  0x4f   : > { %v797_v5 = vld [vmem:[%s3706_s6] sm:$0xff]  ;;  %v798_v6 = vld [vmem:[%s3706_s6 + $0x8] sm:$0xff]  ;;  %v799_v7 = vld [vmem:[%s3706_s6 + $0x10] sm:$0xff]  ;;  %928 = vperm.xlu0 %3351, %v862_v35   ;;  %938 = vperm.xlu1 %3352, %v864_v38   ;;  %s2677_s11 = sshll.u32 %s5250_s9, 4  ;;  %s2663_s25 = scalar_lea.sflag [#allocation4], %s3695_s24  ;;  %s5455_s11 = int_to_ptr.vmem [resolvable:$true] %s2677_s11 }
  0x50   : > { %v3001_v8 = vpack.c.bf16 %v798_v6, %v797_v5  ;;  %v800_v9 = vld [vmem:[%s3706_s6 + $0x18] sm:$0xff]  ;;  %v801_v11 = vld [vmem:[%s3706_s6 + $0x20] sm:$0xff]  ;;  %v802_v12 = vld [vmem:[%s3706_s6 + $0x28] sm:$0xff]  ;;  %s3353_s28 = scalar_lea.vmem %s5455_s11, 8192  ;;  %s3451_s29 = smov [#allocation3]  }
  0x51   : > { %v3004_v10 = vpack.c.bf16 %v800_v9, %v799_v7  ;;  %v3007_v13 = vpack.c.bf16 %v802_v12, %v801_v11  ;;  %v803_v14 = vld [vmem:[%s3706_s6 + $0x30] sm:$0xff]  ;;  %v804_v15 = vld [vmem:[%s3706_s6 + $0x38] sm:$0xff]  ;;  %v805_v17 = vld [vmem:[%s3706_s6 + $0x40] sm:$0xff]  ;;  %p3354_p1 = scmp.ne.s32.totalorder %s5455_s11, %s3353_s28  ;;  %s3357_s30 = sshll.u32 %s3451_s29, 4  ;;  %s3358_s30 = int_to_ptr.vmem [resolvable:$false] %s3357_s30 }
  0x52   : > { %3002 = vmatpush1.bf16.msra.mxu0 %v3001_v8  ;;  %3112 = vmatpush1.bf16.msra.mxu1 %v3001_v8  ;;  %v3010_v16 = vpack.c.bf16 %v804_v15, %v803_v14  ;;  %v806_v18 = vld [vmem:[%s3706_s6 + $0x48] sm:$0xff]  ;;  %v807_v20 = vld [vmem:[%s3706_s6 + $0x50] sm:$0xff]  ;;  %v808_v21 = vld [vmem:[%s3706_s6 + $0x58] sm:$0xff]  ;;  %s3359_s5 = scalar_lea.vmem %s3358_s30, 16384  ;;  %p3360_p4 = scmp.lt.s32.totalorder %s5455_s11, %s3358_s30 }
  0x53   : > { %3003 = vmatprep.subr.bf16.mxu0 %v3449_v3  ;;  %3097 = vmatprep.subr.bf16.mxu1 %v3449_v3  ;;  %v3013_v19 = vpack.c.bf16 %v806_v18, %v805_v17  ;;  %v3016_v22 = vpack.c.bf16 %v808_v21, %v807_v20  ;;  %v809_v23 = vld [vmem:[%s3706_s6 + $0x60] sm:$0xff]  ;;  %v810_v24 = vld [vmem:[%s3706_s6 + $0x68] sm:$0xff]  ;;  %v811_v26 = vld [vmem:[%s3706_s6 + $0x70] sm:$0xff]  ;;  %p3355_p2 = pnand %p3354_p1, %p3535_p8  ;;  %p3361_p5 = scmp.lt.s32.totalorder %s3359_s5, %s3353_s28 }
  0x54   : > { %v3019_v25 = vpack.c.bf16 %v810_v24, %v809_v23  ;;  %v812_v27 = vld [vmem:[%s3706_s6 + $0x78] sm:$0xff]  ;;  %v813_v29 = vld [vmem:[%s3706_s6 + $0x80] sm:$0xff]  ;;  %v814_v30 = vld [vmem:[%s3706_s6 + $0x88] sm:$0xff]  ;;  %933 = vperm.xlu0 %3351, %v863_v39   ;;  %943 = vperm.xlu1 %3352, %v865_v43  }
  0x55   : > { %v3022_v28 = vpack.c.bf16 %v812_v27, %v811_v26  ;;  %v3025_v31 = vpack.c.bf16 %v814_v30, %v813_v29  ;;  %v815_v32 = vld [vmem:[%s3706_s6 + $0x90] sm:$0xff]  ;;  %v816_v33 = vld [vmem:[%s3706_s6 + $0x98] sm:$0xff]  ;;  %v817_v36 = vld [vmem:[%s3706_s6 + $0xa0] sm:$0xff]  ;;  %p3356_p3 = pneg %p3355_p2  ;;  %p3362_p6 = por %p3361_p5, %p3360_p4 }
  0x56   : > { %3005 = vmatpush1.bf16.msra.mxu0 %v3004_v10  ;;  %3113 = vmatpush1.bf16.msra.mxu1 %v3004_v10  ;;  %v3028_v34 = vpack.c.bf16 %v816_v33, %v815_v32  ;;  %v818_v37 = vld [vmem:[%s3706_s6 + $0xa8] sm:$0xff]  ;;  %v819_v41 = vld [vmem:[%s3706_s6 + $0xb0] sm:$0xff]  ;;  %v820_v42 = vld [vmem:[%s3706_s6 + $0xb8] sm:$0xff] }
  0x57   : > { %3006 = vmatprep.subr.bf16.mxu0 %v3449_v3  ;;  %3098 = vmatprep.subr.bf16.mxu1 %v3449_v3  ;;  %v3031_v40 = vpack.c.bf16 %v818_v37, %v817_v36  ;;  %v3034_v45 = vpack.c.bf16 %v820_v42, %v819_v41  ;;  %v821_v47 = vld [vmem:[%s3706_s6 + $0xc0] sm:$0xff]  ;;  %v822_v48 = vld [vmem:[%s3706_s6 + $0xc8] sm:$0xff]  ;;  %v823_v52 = vld [vmem:[%s3706_s6 + $0xd0] sm:$0xff]  ;;  %p3363_p7 = pnand %p3362_p6, %p3356_p3 }
  0x58   : > { %948 = vperm.xlu0 %3351, %v866_v44   ;;  %953 = vperm.xlu1 %3352, %v867_v46   ;;  %v3037_v50 = vpack.c.bf16 %v822_v48, %v821_v47  ;;  %v824_v53 = vld [vmem:[%s3706_s6 + $0xd8] sm:$0xff]  ;;  %v871_v56 = vld [vmem:[%s5513_s2 + $0x48] sm:$0xff]  ;;  %v827_v62 = vld [vmem:[%s3706_s6 + $0xf0] sm:$0xff] }
  0x59   : > { %v3040_v55 = vpack.c.bf16 %v824_v53, %v823_v52  ;;  %v825_v57 = vld [vmem:[%s3706_s6 + $0xe0] sm:$0xff]  ;;  %v826_v58 = vld [vmem:[%s3706_s6 + $0xe8] sm:$0xff]  ;;  %v873_v61 = vld [vmem:[%s5513_s2 + $0x58] sm:$0xff] }
  0x5a   : > { %3008 = vmatpush1.bf16.msra.mxu0 %v3007_v13  ;;  %3114 = vmatpush1.bf16.msra.mxu1 %v3007_v13  ;;  %v3043_v60 = vpack.c.bf16 %v826_v58, %v825_v57  ;;  %v828_v63 = vld [vmem:[%s3706_s6 + $0xf8] sm:$0xff]  ;;  %v875_v2 = vld [vmem:[%s5513_s2 + $0x68] sm:$0xff]  ;;  %v876_v7 = vld [vmem:[%s5513_s2 + $0x70] sm:$0xff] }
  0x5b   : > { %3009 = vmatprep.subr.bf16.mxu0 %v3449_v3  ;;  %3099 = vmatprep.subr.bf16.mxu1 %v3449_v3  ;;  %v874_v0 = vld [vmem:[%s5513_s2 + $0x60] sm:$0xff]  ;;  %v3046_v1 = vpack.c.bf16 %v828_v63, %v827_v62  ;;  %v830_v5 = vld [vmem:[%s3706_s6 + $0x108] sm:$0xff]  ;;  %v831_v11 = vld [vmem:[%s3706_s6 + $0x110] sm:$0xff] }
  0x5c   : > { %958 = vperm.xlu0 %3351, %v868_v49   ;;  %963 = vperm.xlu1 %3352, %v869_v51   ;;  %v829_v4 = vld [vmem:[%s3706_s6 + $0x100] sm:$0xff]  ;;  %v832_v12 = vld [vmem:[%s3706_s6 + $0x118] sm:$0xff]  ;;  %v483_v13 = vld [vmem:[%s5512_s1 + $0x30] sm:$0xff] }
  0x5d   : > { %v861_v6 = vld [vmem:[%s3706_s6 + $0x200] sm:$0x1]  ;;  %v3049_v10 = vpack.c.bf16 %v830_v5, %v829_v4  ;;  %v563_v14 = vld [vmem:[%s5512_s1 + $0x2b0] sm:$0xff]  ;;  %v877_v15 = vld [vmem:[%s5513_s2 + $0x78] sm:$0xff]  ;;  %v3052_v18 = vpack.c.bf16 %v832_v12, %v831_v11 }
  0x5e   : > { %3011 = vmatpush1.bf16.msra.mxu0 %v3010_v16  ;;  %3115 = vmatpush1.bf16.msra.mxu1 %v3010_v16  ;;  %v477_v8 = vld [vmem:[%s5512_s1] sm:$0xff]  ;;  %v482_v16 = vld [vmem:[%s5512_s1 + $0x28] sm:$0xff]  ;;  %v567_v26 = vld [vmem:[%s5512_s1 + $0x2d0] sm:$0xff] }
  0x5f   : > { %3012 = vmatprep.subr.bf16.mxu0 %v3449_v3  ;;  %3100 = vmatprep.subr.bf16.mxu1 %v3449_v3  ;;  %v557_v9 = vld [vmem:[%s5512_s1 + $0x280] sm:$0xff]  ;;  %v562_v17 = vld [vmem:[%s5512_s1 + $0x2a8] sm:$0xff]  ;;  %v835_v29 = vld [vmem:[%s3706_s6 + $0x130] sm:$0xff] }
  0x60   : > { %968 = vperm.xlu0 %3351, %v870_v54   ;;  %973 = vperm.xlu1 %3352, %v871_v56   ;;  %v833_v20 = vld [vmem:[%s3706_s6 + $0x120] sm:$0xff]  ;;  %v834_v21 = vld [vmem:[%s3706_s6 + $0x128] sm:$0xff]  ;;  %v836_v30 = vld [vmem:[%s3706_s6 + $0x138] sm:$0xff] }
  0x61   : > { %v878_v23 = vld [vmem:[%s5513_s2 + $0x80] sm:$0xff]  ;;  %v879_v24 = vld [vmem:[%s5513_s2 + $0x88] sm:$0xff]  ;;  %v3055_v27 = vpack.c.bf16 %v834_v21, %v833_v20  ;;  %v880_v32 = vld [vmem:[%s5513_s2 + $0x90] sm:$0xff]  ;;  %v3058_v36 = vpack.c.bf16 %v836_v30, %v835_v29 }
  0x62   : > { %3014 = vmatpush1.bf16.msra.mxu0 %v3013_v19  ;;  %3116 = vmatpush1.bf16.msra.mxu1 %v3013_v19  ;;  %v488_v19 = vld [vmem:[%s5512_s1 + $0x58] sm:$0xff]  ;;  %v498_v37 = vld [vmem:[%s5512_s1 + $0xa8] sm:$0xff]  ;;  %v882_v41 = vld [vmem:[%s5513_s2 + $0xa0] sm:$0xff] }
  0x63   : > { %3015 = vmatprep.subr.bf16.mxu0 %v3449_v3  ;;  %3101 = vmatprep.subr.bf16.mxu1 %v3449_v3  ;;  %v881_v33 = vld [vmem:[%s5513_s2 + $0x98] sm:$0xff]  ;;  %v837_v38 = vld [vmem:[%s3706_s6 + $0x140] sm:$0xff]  ;;  %v838_v39 = vld [vmem:[%s3706_s6 + $0x148] sm:$0xff] }
  0x64   : > { %978 = vperm.xlu0 %3351, %v872_v59   ;;  %983 = vperm.xlu1 %3352, %v873_v61   ;;  %v572_v35 = vld [vmem:[%s5512_s1 + $0x2f8] sm:$0xff]  ;;  %v883_v42 = vld [vmem:[%s5513_s2 + $0xa8] sm:$0xff]  ;;  %v497_v43 = vld [vmem:[%s5512_s1 + $0xa0] sm:$0xff] }
  0x65   : > { %v577_v44 = vld [vmem:[%s5512_s1 + $0x320] sm:$0xff]  ;;  %v503_v46 = vld [vmem:[%s5512_s1 + $0xd0] sm:$0xff]  ;;  %v885_v51 = vld [vmem:[%s5513_s2 + $0xb8] sm:$0xff] }
  0x66   : > { %3017 = vmatpush1.bf16.msra.mxu0 %v3016_v22  ;;  %3117 = vmatpush1.bf16.msra.mxu1 %v3016_v22  ;;  %v568_v22 = vld [vmem:[%s5512_s1 + $0x2d8] sm:$0xff]  ;;  %v583_v49 = vld [vmem:[%s5512_s1 + $0x350] sm:$0xff]  ;;  %v502_v52 = vld [vmem:[%s5512_s1 + $0xc8] sm:$0xff] }
  0x67   : > { %3018 = vmatprep.subr.bf16.mxu0 %v3449_v3  ;;  %3102 = vmatprep.subr.bf16.mxu1 %v3449_v3  ;;  %v839_v47 = vld [vmem:[%s3706_s6 + $0x150] sm:$0xff]  ;;  %v840_v48 = vld [vmem:[%s3706_s6 + $0x158] sm:$0xff]  ;;  %v582_v53 = vld [vmem:[%s5512_s1 + $0x348] sm:$0xff] }
  0x68   : > { %988 = vperm.xlu0 %3351, %v874_v0   ;;  %993 = vperm.xlu1 %3352, %v875_v2   ;;  %v3064_v54 = vpack.c.bf16 %v840_v48, %v839_v47  ;;  %v841_v56 = vld [vmem:[%s3706_s6 + $0x160] sm:$0xff]  ;;  %v842_v57 = vld [vmem:[%s3706_s6 + $0x168] sm:$0xff]  ;;  %v588_v58 = vld [vmem:[%s5512_s1 + $0x378] sm:$0xff] }
  0x69   : > { %v886_v59 = vld [vmem:[%s5513_s2 + $0xc0] sm:$0xff]  ;;  %v507_v61 = vld [vmem:[%s5512_s1 + $0xf0] sm:$0xff]  ;;  %v3067_v63 = vpack.c.bf16 %v842_v57, %v841_v56 }
  0x6a   : > { %3020 = vmatpush1.bf16.msra.mxu0 %v3019_v25  ;;  %3118 = vmatpush1.bf16.msra.mxu1 %v3019_v25  ;;  %v487_v25 = vld [vmem:[%s5512_s1 + $0x50] sm:$0xff]  ;;  %v513_v0 = vld [vmem:[%s5512_s1 + $0x120] sm:$0xff] }
  0x6b   : > { %3021 = vmatprep.subr.bf16.mxu0 %v3449_v3  ;;  %3103 = vmatprep.subr.bf16.mxu1 %v3449_v3  ;;  %v587_v62 = vld [vmem:[%s5512_s1 + $0x370] sm:$0xff]  ;;  %v844_v2 = vld [vmem:[%s3706_s6 + $0x178] sm:$0xff]  ;;  %v845_v11 = vld [vmem:[%s3706_s6 + $0x180] sm:$0xff] }
  0x6c   : > { %998 = vperm.xlu0 %3351, %v876_v7   ;;  %1003 = vperm.xlu1 %3352, %v877_v15   ;;  %v593_v4 = vld [vmem:[%s5512_s1 + $0x3a0] sm:$0xff]  ;;  %v888_v5 = vld [vmem:[%s5513_s2 + $0xd0] sm:$0xff]  ;;  %v512_v7 = vld [vmem:[%s5512_s1 + $0x118] sm:$0xff] }
  0x6d   : > { %v846_v12 = vld [vmem:[%s3706_s6 + $0x188] sm:$0xff]  ;;  %v847_v20 = vld [vmem:[%s3706_s6 + $0x190] sm:$0xff]  ;;  %v848_v21 = vld [vmem:[%s3706_s6 + $0x198] sm:$0xff] }
  0x6e   : > { %3023 = vmatpush1.bf16.msra.mxu0 %v3022_v28  ;;  %3119 = vmatpush1.bf16.msra.mxu1 %v3022_v28  ;;  %v493_v28 = vld [vmem:[%s5512_s1 + $0x80] sm:$0xff]  ;;  %v891_v15 = vld [vmem:[%s5513_s2 + $0xe8] sm:$0xff]  ;;  %v855_v56 = vld [vmem:[%s3706_s6 + $0x1d0] sm:$0xff] }
  0x6f   : > { %3024 = vmatprep.subr.bf16.mxu0 %v3449_v3  ;;  %3104 = vmatprep.subr.bf16.mxu1 %v3449_v3  ;;  %v849_v29 = vld [vmem:[%s3706_s6 + $0x1a0] sm:$0xff]  ;;  %v850_v30 = vld [vmem:[%s3706_s6 + $0x1a8] sm:$0xff]  ;;  %v856_v57 = vld [vmem:[%s3706_s6 + $0x1d8] sm:$0xff] }
  0x70   : > { %1008 = vperm.xlu0 %3351, %v878_v23   ;;  %1013 = vperm.xlu1 %3352, %v879_v24   ;;  %v892_v23 = vld [vmem:[%s5513_s2 + $0xf0] sm:$0xff]  ;;  %v893_v24 = vld [vmem:[%s5513_s2 + $0xf8] sm:$0xff]  ;;  %v853_v47 = vld [vmem:[%s3706_s6 + $0x1c0] sm:$0xff] }
  0x71   : > { %v854_v48 = vld [vmem:[%s3706_s6 + $0x1c8] sm:$0xff] }
  0x72   : > { %3026 = vmatpush1.bf16.msra.mxu0 %v3025_v31  ;;  %3120 = vmatpush1.bf16.msra.mxu1 %v3025_v31  ;;  %v573_v31 = vld [vmem:[%s5512_s1 + $0x300] sm:$0xff] }
  0x73   : > { %3027 = vmatprep.subr.bf16.mxu0 %v3449_v3  ;;  %3105 = vmatprep.subr.bf16.mxu1 %v3449_v3 }
  0x74   : > { %1018 = vperm.xlu0 %3351, %v880_v32   ;;  %1023 = vperm.xlu1 %3352, %v881_v33   ;;  %v894_v32 = vld [vmem:[%s5513_s2 + $0x100] sm:$0xff]  ;;  %v895_v33 = vld [vmem:[%s5513_s2 + $0x108] sm:$0xff] }
  0x76   : > { %3029 = vmatpush1.bf16.msra.mxu0 %v3028_v34  ;;  %3121 = vmatpush1.bf16.msra.mxu1 %v3028_v34  ;;  %v492_v34 = vld [vmem:[%s5512_s1 + $0x78] sm:$0xff] }
  0x77   : > { %3030 = vmatprep.subr.bf16.mxu0 %v3449_v3  ;;  %3106 = vmatprep.subr.bf16.mxu1 %v3449_v3 }
  0x78   : > { %1028 = vperm.xlu0 %3351, %v882_v41   ;;  %1033 = vperm.xlu1 %3352, %v883_v42   ;;  %v896_v41 = vld [vmem:[%s5513_s2 + $0x110] sm:$0xff]  ;;  %v897_v42 = vld [vmem:[%s5513_s2 + $0x118] sm:$0xff] }
  0x7a   : > { %3032 = vmatpush1.bf16.msra.mxu0 %v3031_v40  ;;  %3122 = vmatpush1.bf16.msra.mxu1 %v3031_v40  ;;  %v578_v40 = vld [vmem:[%s5512_s1 + $0x328] sm:$0xff] }
  0x7b   : > { %3033 = vmatprep.subr.bf16.mxu0 %v3449_v3  ;;  %3107 = vmatprep.subr.bf16.mxu1 %v3449_v3 }
  0x7c   : > { %1043 = vperm.xlu1 %3352, %v885_v51   ;;  %v899_v51 = vld [vmem:[%s5513_s2 + $0x128] sm:$0xff] }
  0x7e   : > { %3035 = vmatpush1.bf16.msra.mxu0 %v3034_v45  ;;  %3123 = vmatpush1.bf16.msra.mxu1 %v3034_v45  ;;  %v3061_v45 = vpack.c.bf16 %v838_v39, %v837_v38  ;;  %v851_v38 = vld [vmem:[%s3706_s6 + $0x1b0] sm:$0xff]  ;;  %v852_v39 = vld [vmem:[%s3706_s6 + $0x1b8] sm:$0xff] }
  0x7f   : > { %3036 = vmatprep.subr.bf16.mxu0 %v3449_v3  ;;  %3108 = vmatprep.subr.bf16.mxu1 %v3449_v3 }
  0x82   : > { %3038 = vmatpush1.bf16.msra.mxu0 %v3037_v50  ;;  %3124 = vmatpush1.bf16.msra.mxu1 %v3037_v50  ;;  %v884_v50 = vld [vmem:[%s5513_s2 + $0xb0] sm:$0xff] }
  0x83   : > { %3039 = vmatprep.subr.bf16.mxu0 %v3449_v3  ;;  %3109 = vmatprep.subr.bf16.mxu1 %v3449_v3 }
  0x84   : > { %1038 = vperm.xlu0 %3351, %v884_v50   ;;  %v898_v50 = vld [vmem:[%s5513_s2 + $0x120] sm:$0xff] }
  0x86   : > { %3041 = vmatpush1.bf16.msra.mxu0 %v3040_v55  ;;  %3125 = vmatpush1.bf16.msra.mxu1 %v3040_v55  ;;  %v508_v55 = vld [vmem:[%s5512_s1 + $0xf8] sm:$0xff] }
  0x87   : > { %3042 = vmatprep.subr.bf16.mxu0 %v3449_v3  ;;  %3110 = vmatprep.subr.bf16.mxu1 %v3449_v3 }
  0x88   : > { %1048 = vperm.xlu0 %3351, %v886_v59   ;;  %v900_v59 = vld [vmem:[%s5513_s2 + $0x130] sm:$0xff] }
  0x8a   : > { %3044 = vmatpush1.bf16.msra.mxu0 %v3043_v60  ;;  %3126 = vmatpush1.bf16.msra.mxu1 %v3043_v60  ;;  %v887_v60 = vld [vmem:[%s5513_s2 + $0xc8] sm:$0xff] }
  0x8b   : > { %3045 = vmatprep.subr.bf16.mxu0 %v3449_v3  ;;  %3111 = vmatprep.subr.bf16.mxu1 %v3449_v3 }
  0x8c   : > { %1053 = vperm.xlu1 %3352, %v887_v60   ;;  %1058 = vperm.xlu0 %3351, %v888_v5   ;;  %v901_v60 = vld [vmem:[%s5513_s2 + $0x138] sm:$0xff]  ;;  %v902_v5 = vld [vmem:[%s5513_s2 + $0x140] sm:$0xff] }
  0x8e   : > { %3047 = vmatpush1.bf16.msra.mxu0 %v3046_v1  ;;  %3127 = vmatpush1.bf16.msra.mxu1 %v3046_v1  ;;  %v843_v1 = vld [vmem:[%s3706_s6 + $0x170] sm:$0xff] }
  0x8f   : > { %3048 = vmatprep.subr.bf16.mxu0 %v3449_v3  ;;  %2902 = vmatprep.subr.msk.mxu1 %vm1439_vm0, %v861_v6 }
  0x91   : > { %1508 = vmatmul.mubr.f32.vlgmr.msra.gmra.mrb[0].mxu0 %v477_v8  ;;  %1588 = vmatmul.mubr.f32.vlgmr.msra.gmra.mrb[0].mxu1 %v557_v9  ;;  %v592_v8 = vld [vmem:[%s5512_s1 + $0x398] sm:$0xff]  ;;  %v3070_v9 = vpack.c.bf16 %v844_v2, %v843_v1  ;;  %v857_v1 = vld [vmem:[%s3706_s6 + $0x1e0] sm:$0xff]  ;;  %v858_v2 = vld [vmem:[%s3706_s6 + $0x1e8] sm:$0xff] }
  0x92   : > { %3050 = vmatpush1.bf16.msra.mxu0 %v3049_v10  ;;  %2903 = vmatpush3.msk.msra.mxu1 %vm1439_vm0, %v861_v6  ;;  %v889_v6 = vld [vmem:[%s5513_s2 + $0xd8] sm:$0xff]  ;;  %v518_v10 = vld [vmem:[%s5512_s1 + $0x148] sm:$0xff] }
  0x93   : > { %1512 = vmatprep.mubr.f32.mxu0 %v483_v13  ;;  %1592 = vmatprep.mubr.f32.mxu1 %v563_v14  ;;  %v598_v13 = vld [vmem:[%s5512_s1 + $0x3c8] sm:$0xff]  ;;  %v890_v14 = vld [vmem:[%s5513_s2 + $0xe0] sm:$0xff] }
  0x94   : > { %3051 = vmatprep.subr.bf16.mxu0 %v3449_v3  ;;  %1063 = vperm.xlu1 %3352, %v889_v6   ;;  %v547_v6 = vld [vmem:[%s5512_s1 + $0x230] sm:$0xff] }
  0x95   : > { %1513 = vmatmul.mubr.f32.gmra.mrb[2].mxu0 %v482_v16  ;;  %1593 = vmatmul.mubr.f32.gmra.mrb[2].mxu1 %v562_v17  ;;  %v517_v16 = vld [vmem:[%s5512_s1 + $0x140] sm:$0xff] }
  0x96   : > { %3053 = vmatpush1.bf16.msra.mxu0 %v3052_v18  ;;  %1517 = vmatprep.mubr.f32.mxu0 %v488_v19  ;;  %v597_v17 = vld [vmem:[%s5512_s1 + $0x3c0] sm:$0xff]  ;;  %v3073_v18 = vpack.c.bf16 %v846_v12, %v845_v11  ;;  %v523_v19 = vld [vmem:[%s5512_s1 + $0x170] sm:$0xff] }
  0x97   : > { %1597 = vmatprep.mubr.f32.mxu1 %v568_v22  ;;  %3054 = vmatprep.subr.bf16.mxu0 %v3449_v3  ;;  %v603_v22 = vld [vmem:[%s5512_s1 + $0x3f0] sm:$0xff]  ;;  %v860_v11 = vld [vmem:[%s3706_s6 + $0x1f8] sm:$0xff] }
  0x98   : > { %1068 = vperm.xlu0 %3351, %v890_v14   ;;  %1073 = vperm.xlu1 %3352, %v891_v15   ;;  %v633_v12 = vld [vmem:[%s5512_s1 + $0x4e0] sm:$0xff]  ;;  %v552_v14 = vld [vmem:[%s5512_s1 + $0x258] sm:$0xff] }
  0x99   : > { %1518 = vmatmul.mubr.f32.gmra.mrb[4].mxu0 %v487_v25  ;;  %1598 = vmatmul.mubr.f32.gmra.mrb[4].mxu1 %v567_v26  ;;  %v522_v25 = vld [vmem:[%s5512_s1 + $0x168] sm:$0xff]  ;;  %v632_v15 = vld [vmem:[%s5512_s1 + $0x4d8] sm:$0xff] }
  0x9a   : > { %3056 = vmatpush1.bf16.msra.mxu0 %v3055_v27  ;;  %1522 = vmatprep.mubr.f32.mxu0 %v493_v28  ;;  %v602_v26 = vld [vmem:[%s5512_s1 + $0x3e8] sm:$0xff]  ;;  %v3076_v27 = vpack.c.bf16 %v848_v21, %v847_v20  ;;  %v528_v28 = vld [vmem:[%s5512_s1 + $0x198] sm:$0xff]  ;;  %v479_v20 = vld [vmem:[%s5512_s1 + $0x10] sm:$0xff] }
  0x9b   : > { %1602 = vmatprep.mubr.f32.mxu1 %v573_v31  ;;  %3057 = vmatprep.subr.bf16.mxu0 %v3449_v3  ;;  %v608_v31 = vld [vmem:[%s5512_s1 + $0x418] sm:$0xff]  ;;  %v643_v21 = vld [vmem:[%s5512_s1 + $0x530] sm:$0xff] }
  0x9c   : > { %1078 = vperm.xlu0 %3351, %v892_v23   ;;  %1083 = vperm.xlu1 %3352, %v893_v24   ;;  %v905_v23 = vld [vmem:[%s5513_s2 + $0x158] sm:$0xff]  ;;  %v642_v24 = vld [vmem:[%s5512_s1 + $0x528] sm:$0xff] }
  0x9d   : > { %1523 = vmatmul.mubr.f32.gmra.mrb[6].mxu0 %v492_v34  ;;  %1603 = vmatmul.mubr.f32.gmra.mrb[6].mxu1 %v572_v35  ;;  %v527_v34 = vld [vmem:[%s5512_s1 + $0x190] sm:$0xff] }
  0x9e   : > { %3059 = vmatpush1.bf16.msra.mxu0 %v3058_v36  ;;  %1527 = vmatprep.mubr.f32.mxu0 %v498_v37  ;;  %v607_v35 = vld [vmem:[%s5512_s1 + $0x410] sm:$0xff]  ;;  %v3079_v36 = vpack.c.bf16 %v850_v30, %v849_v29  ;;  %v533_v37 = vld [vmem:[%s5512_s1 + $0x1c0] sm:$0xff] }
  0x9f   : > { %1607 = vmatprep.mubr.f32.mxu1 %v578_v40  ;;  %3060 = vmatprep.subr.bf16.mxu0 %v3449_v3  ;;  %v613_v40 = vld [vmem:[%s5512_s1 + $0x440] sm:$0xff]  ;;  %v647_v29 = vld [vmem:[%s5512_s1 + $0x550] sm:$0xff] }
  0xa0   : > { %1088 = vperm.xlu0 %3351, %v894_v32   ;;  %1093 = vperm.xlu1 %3352, %v895_v33   ;;  %v489_v30 = vld [vmem:[%s5512_s1 + $0x60] sm:$0xff]  ;;  %v495_v32 = vld [vmem:[%s5512_s1 + $0x90] sm:$0xff]  ;;  %v907_v33 = vld [vmem:[%s5513_s2 + $0x168] sm:$0xff] }
  0xa1   : > { %1528 = vmatmul.mubr.f32.gmra.mrb[8].mxu0 %v497_v43  ;;  %1608 = vmatmul.mubr.f32.gmra.mrb[8].mxu1 %v577_v44  ;;  %v532_v43 = vld [vmem:[%s5512_s1 + $0x1b8] sm:$0xff] }
  0xa2   : > { %3062 = vmatpush1.bf16.msra.mxu0 %v3061_v45  ;;  %1532 = vmatprep.mubr.f32.mxu0 %v503_v46  ;;  %v612_v44 = vld [vmem:[%s5512_s1 + $0x438] sm:$0xff]  ;;  %v3082_v45 = vpack.c.bf16 %v852_v39, %v851_v38  ;;  %v538_v46 = vld [vmem:[%s5512_s1 + $0x1e8] sm:$0xff]  ;;  %v908_v38 = vld [vmem:[%s5513_s2 + $0x170] sm:$0xff] }
  0xa3   : > { %1612 = vmatprep.mubr.f32.mxu1 %v583_v49  ;;  %3063 = vmatprep.subr.bf16.mxu0 %v3449_v3  ;;  %v618_v49 = vld [vmem:[%s5512_s1 + $0x468] sm:$0xff]  ;;  %v657_v39 = vld [vmem:[%s5512_s1 + $0x5a0] sm:$0xff] }
  0xa4   : > { %1098 = vperm.xlu0 %3351, %v896_v41   ;;  %1103 = vperm.xlu1 %3352, %v897_v42   ;;  %v663_v41 = vld [vmem:[%s5512_s1 + $0x5d0] sm:$0xff]  ;;  %v505_v42 = vld [vmem:[%s5512_s1 + $0xe0] sm:$0xff] }
  0xa5   : > { %1533 = vmatmul.mubr.f32.gmra.mrb[10].mxu0 %v502_v52  ;;  %1613 = vmatmul.mubr.f32.gmra.mrb[10].mxu1 %v582_v53  ;;  %v537_v52 = vld [vmem:[%s5512_s1 + $0x1e0] sm:$0xff] }
  0xa6   : > { %3065 = vmatpush1.bf16.msra.mxu0 %v3064_v54  ;;  %1537 = vmatprep.mubr.f32.mxu0 %v508_v55  ;;  %v617_v53 = vld [vmem:[%s5512_s1 + $0x460] sm:$0xff]  ;;  %v3085_v54 = vpack.c.bf16 %v854_v48, %v853_v47  ;;  %v543_v55 = vld [vmem:[%s5512_s1 + $0x210] sm:$0xff]  ;;  %v510_v47 = vld [vmem:[%s5512_s1 + $0x108] sm:$0xff] }
  0xa7   : > { %1617 = vmatprep.mubr.f32.mxu1 %v588_v58  ;;  %3066 = vmatprep.subr.bf16.mxu0 %v3449_v3  ;;  %v623_v58 = vld [vmem:[%s5512_s1 + $0x490] sm:$0xff]  ;;  %v910_v48 = vld [vmem:[%s5513_s2 + $0x180] sm:$0xff] }
  0xa8   : > { %1108 = vperm.xlu0 %3351, %v898_v50   ;;  %1113 = vperm.xlu1 %3352, %v899_v51   ;;  %v509_v50 = vld [vmem:[%s5512_s1 + $0x100] sm:$0xff] }
  0xa9   : > { %1538 = vmatmul.mubr.f32.gmra.mrb[12].mxu0 %v507_v61  ;;  %1618 = vmatmul.mubr.f32.gmra.mrb[12].mxu1 %v587_v62  ;;  %v542_v61 = vld [vmem:[%s5512_s1 + $0x208] sm:$0xff]  ;;  %v673_v51 = vld [vmem:[%s5512_s1 + $0x620] sm:$0xff] }
  0xaa   : > { %3068 = vmatpush1.bf16.msra.mxu0 %v3067_v63  ;;  %1542 = vmatprep.mubr.f32.mxu0 %v513_v0  ;;  %v622_v62 = vld [vmem:[%s5512_s1 + $0x488] sm:$0xff]  ;;  %v3088_v63 = vpack.c.bf16 %v856_v57, %v855_v56  ;;  %v548_v0 = vld [vmem:[%s5512_s1 + $0x238] sm:$0xff] }
  0xab   : > { %1622 = vmatprep.mubr.f32.mxu1 %v593_v4  ;;  %3069 = vmatprep.subr.bf16.mxu0 %v3449_v3  ;;  %v628_v4 = vld [vmem:[%s5512_s1 + $0x4b8] sm:$0xff]  ;;  %v678_v56 = vld [vmem:[%s5512_s1 + $0x648] sm:$0xff] }
  0xac   : > { %1118 = vperm.xlu0 %3351, %v900_v59   ;;  %1123 = vperm.xlu1 %3352, %v901_v60   ;;  %v520_v57 = vld [vmem:[%s5512_s1 + $0x158] sm:$0xff]  ;;  %v677_v59 = vld [vmem:[%s5512_s1 + $0x640] sm:$0xff]  ;;  %v519_v60 = vld [vmem:[%s5512_s1 + $0x150] sm:$0xff] }
  0xad   : > { %1543 = vmatmul.mubr.f32.gmra.mrb[14].mxu0 %v512_v7  ;;  %1623 = vmatmul.mubr.f32.gmra.mrb[14].mxu1 %v592_v8  ;;  %v627_v7 = vld [vmem:[%s5512_s1 + $0x4b0] sm:$0xff]  ;;  %v3091_v8 = vpack.c.bf16 %v858_v2, %v857_v1  ;;  %v524_v1 = vld [vmem:[%s5512_s1 + $0x178] sm:$0xff] }
  0xae   : > { %3071 = vmatpush1.bf16.msra.mxu0 %v3070_v9  ;;  %1547 = vmatprep.mubr.f32.mxu0 %v518_v10  ;;  %v553_v9 = vld [vmem:[%s5512_s1 + $0x260] sm:$0xff]  ;;  %v859_v10 = vld [vmem:[%s3706_s6 + $0x1f0] sm:$0xff]  ;;  %s2674_s6 = sadd.s32 %s3431_s15, %s2833_s10 }
  0xaf   : > { %1627 = vmatprep.mubr.f32.mxu1 %v598_v13  ;;  %3072 = vmatprep.subr.bf16.mxu0 %v3449_v3  ;;  %v903_v13 = vld [vmem:[%s5513_s2 + $0x148] sm:$0xff]  ;;  %v688_v2 = vld [vmem:[%s5512_s1 + $0x698] sm:$0xff]  ;;  %s2834_s16 = sshll.u32 %s2674_s6, 7 }
  0xb0   : > { %1128 = vperm.xlu0 %3351, %v902_v5   ;;  %1133 = vperm.xlu1 %3352, %v903_v13   ;;  %v914_v5 = vld [vmem:[%s5513_s2 + $0x1a0] sm:$0xff]  ;;  %v698_v13 = vld [vmem:[%s5512_s1 + $0x6e8] sm:$0xff]  ;;  %s5453_s21 = scalar_lea.hbm %s5514_s3, %s2834_s16 }
  0xb1   : > { %1548 = vmatmul.mubr.f32.gmra.mrb[16].mxu0 %v517_v16  ;;  %1628 = vmatmul.mubr.f32.gmra.mrb[16].mxu1 %v597_v17  ;;  %v3094_v16 = vpack.c.bf16 %v860_v11, %v859_v10  ;;  %v638_v17 = vld [vmem:[%s5512_s1 + $0x508] sm:$0xff]  ;;  %v692_v11 = vld [vmem:[%s5512_s1 + $0x6b8] sm:$0xff] }
  0xb2   : > { %3074 = vmatpush1.bf16.msra.mxu0 %v3073_v18  ;;  %1552 = vmatprep.mubr.f32.mxu0 %v523_v19  ;;  %v480_v18 = vld [vmem:[%s5512_s1 + $0x18] sm:$0xff]  ;;  %v904_v19 = vld [vmem:[%s5513_s2 + $0x150] sm:$0xff]  ;;  %v915_v10 = vld [vmem:[%s5513_s2 + $0x1a8] sm:$0xff] }
  0xb3   : > { %1632 = vmatprep.mubr.f32.mxu1 %v603_v22  ;;  %3075 = vmatprep.subr.bf16.mxu0 %v3449_v3  ;;  %v485_v22 = vld [vmem:[%s5512_s1 + $0x40] sm:$0xff] }
  0xb4   : > { %1138 = vperm.xlu0 %3351, %v904_v19   ;;  %1143 = vperm.xlu1 %3352, %v905_v23   ;;  %v545_v19 = vld [vmem:[%s5512_s1 + $0x220] sm:$0xff]  ;;  %v550_v23 = vld [vmem:[%s5512_s1 + $0x248] sm:$0xff] }
  0xb5   : > { %1553 = vmatmul.mubr.f32.gmra.mrb[18].mxu0 %v522_v25  ;;  %1633 = vmatmul.mubr.f32.gmra.mrb[18].mxu1 %v602_v26  ;;  %v484_v25 = vld [vmem:[%s5512_s1 + $0x38] sm:$0xff] }
  0xb6   : > { %3077 = vmatpush1.bf16.msra.mxu0 %v3076_v27  ;;  %1557 = vmatprep.mubr.f32.mxu0 %v528_v28  ;;  %v648_v26 = vld [vmem:[%s5512_s1 + $0x558] sm:$0xff]  ;;  %v490_v27 = vld [vmem:[%s5512_s1 + $0x68] sm:$0xff]  ;;  %v906_v28 = vld [vmem:[%s5513_s2 + $0x160] sm:$0xff] }
  0xb7   : > { %1637 = vmatprep.mubr.f32.mxu1 %v608_v31  ;;  %3078 = vmatprep.subr.bf16.mxu0 %v3449_v3  ;;  %v653_v31 = vld [vmem:[%s5512_s1 + $0x580] sm:$0xff] }
  0xb8   : > { %1148 = vperm.xlu0 %3351, %v906_v28   ;;  %1153 = vperm.xlu1 %3352, %v907_v33   ;;  %v555_v28 = vld [vmem:[%s5512_s1 + $0x270] sm:$0xff]  ;;  %v560_v33 = vld [vmem:[%s5512_s1 + $0x298] sm:$0xff] }
  0xb9   : > { %1558 = vmatmul.mubr.f32.gmra.mrb[20].mxu0 %v527_v34  ;;  %1638 = vmatmul.mubr.f32.gmra.mrb[20].mxu1 %v607_v35  ;;  %v652_v34 = vld [vmem:[%s5512_s1 + $0x578] sm:$0xff]  ;;  %v494_v35 = vld [vmem:[%s5512_s1 + $0x88] sm:$0xff] }
  0xba   : > { %3080 = vmatpush1.bf16.msra.mxu0 %v3079_v36  ;;  %1562 = vmatprep.mubr.f32.mxu0 %v533_v37  ;;  %v658_v36 = vld [vmem:[%s5512_s1 + $0x5a8] sm:$0xff]  ;;  %v500_v37 = vld [vmem:[%s5512_s1 + $0xb8] sm:$0xff] }
  0xbb   : > { %1642 = vmatprep.mubr.f32.mxu1 %v613_v40  ;;  %3081 = vmatprep.subr.bf16.mxu0 %v3449_v3  ;;  %v499_v40 = vld [vmem:[%s5512_s1 + $0xb0] sm:$0xff] }
  0xbc   : > { %1158 = vperm.xlu0 %3351, %v908_v38   ;;  %v565_v38 = vld [vmem:[%s5512_s1 + $0x2c0] sm:$0xff] }
  0xbd   : > { %1563 = vmatmul.mubr.f32.gmra.mrb[22].mxu0 %v532_v43  ;;  %1643 = vmatmul.mubr.f32.gmra.mrb[22].mxu1 %v612_v44  ;;  %v909_v43 = vld [vmem:[%s5513_s2 + $0x178] sm:$0xff]  ;;  %v662_v44 = vld [vmem:[%s5512_s1 + $0x5c8] sm:$0xff] }
  0xbe   : > { %3083 = vmatpush1.bf16.msra.mxu0 %v3082_v45  ;;  %1567 = vmatprep.mubr.f32.mxu0 %v538_v46  ;;  %v504_v45 = vld [vmem:[%s5512_s1 + $0xd8] sm:$0xff] }
  0xbf   : > { %1647 = vmatprep.mubr.f32.mxu1 %v618_v49  ;;  %3084 = vmatprep.subr.bf16.mxu0 %v3449_v3  ;;  %v668_v46 = vld [vmem:[%s5512_s1 + $0x5f8] sm:$0xff]  ;;  %v667_v49 = vld [vmem:[%s5512_s1 + $0x5f0] sm:$0xff] }
  0xc0   : > { %1163 = vperm.xlu1 %3352, %v909_v43   ;;  %1168 = vperm.xlu0 %3351, %v910_v48   ;;  %v570_v43 = vld [vmem:[%s5512_s1 + $0x2e8] sm:$0xff]  ;;  %v575_v48 = vld [vmem:[%s5512_s1 + $0x310] sm:$0xff] }
  0xc1   : > { %1568 = vmatmul.mubr.f32.gmra.mrb[24].mxu0 %v537_v52  ;;  %1648 = vmatmul.mubr.f32.gmra.mrb[24].mxu1 %v617_v53  ;;  %v515_v52 = vld [vmem:[%s5512_s1 + $0x130] sm:$0xff]  ;;  %v911_v53 = vld [vmem:[%s5513_s2 + $0x188] sm:$0xff] }
  0xc2   : > { %3086 = vmatpush1.bf16.msra.mxu0 %v3085_v54  ;;  %1572 = vmatprep.mubr.f32.mxu0 %v543_v55  ;;  %v672_v54 = vld [vmem:[%s5512_s1 + $0x618] sm:$0xff]  ;;  %v514_v55 = vld [vmem:[%s5512_s1 + $0x128] sm:$0xff] }
  0xc3   : > { %1652 = vmatprep.mubr.f32.mxu1 %v623_v58  ;;  %3087 = vmatprep.subr.bf16.mxu0 %v3449_v3  ;;  %v912_v58 = vld [vmem:[%s5513_s2 + $0x190] sm:$0xff] }
  0xc4   : > { %1173 = vperm.xlu1 %3352, %v911_v53   ;;  %1178 = vperm.xlu0 %3351, %v912_v58   ;;  %v580_v53 = vld [vmem:[%s5512_s1 + $0x338] sm:$0xff]  ;;  %v585_v58 = vld [vmem:[%s5512_s1 + $0x360] sm:$0xff] }
  0xc5   : > { %1573 = vmatmul.mubr.f32.gmra.mrb[26].mxu0 %v542_v61  ;;  %1653 = vmatmul.mubr.f32.gmra.mrb[26].mxu1 %v622_v62  ;;  %v683_v61 = vld [vmem:[%s5512_s1 + $0x670] sm:$0xff]  ;;  %v525_v62 = vld [vmem:[%s5512_s1 + $0x180] sm:$0xff] }
  0xc6   : > { %3089 = vmatpush1.bf16.msra.mxu0 %v3088_v63  ;;  %1577 = vmatprep.mubr.f32.mxu0 %v548_v0  ;;  %v913_v63 = vld [vmem:[%s5513_s2 + $0x198] sm:$0xff]  ;;  %v682_v0 = vld [vmem:[%s5512_s1 + $0x668] sm:$0xff] }
  0xc7   : > { %1657 = vmatprep.mubr.f32.mxu1 %v628_v4  ;;  %3090 = vmatprep.subr.bf16.mxu0 %v3449_v3  ;;  %v530_v4 = vld [vmem:[%s5512_s1 + $0x1a8] sm:$0xff] }
  0xc8   : > { %1183 = vperm.xlu1 %3352, %v913_v63   ;;  %1188 = vperm.xlu0 %3351, %v914_v5   ;;  %v590_v63 = vld [vmem:[%s5512_s1 + $0x388] sm:$0xff]  ;;  %v752_v5 = vld [vmem:[%s5512_s1 + $0x898] sm:$0xff] }
  0xc9   : > { %1578 = vmatmul.mubr.f32.gmra.mrb[28].mxu0 %v547_v6  ;;  %1658 = vmatmul.mubr.f32.gmra.mrb[28].mxu1 %v627_v7  ;;  %v687_v6 = vld [vmem:[%s5512_s1 + $0x690] sm:$0xff]  ;;  %v529_v7 = vld [vmem:[%s5512_s1 + $0x1a0] sm:$0xff] }
  0xca   : > { %3092 = vmatpush1.bf16.msra.mxu0 %v3091_v8  ;;  %1582 = vmatprep.mubr.f32.mxu0 %v553_v9  ;;  %v693_v8 = vld [vmem:[%s5512_s1 + $0x6c0] sm:$0xff]  ;;  %v535_v9 = vld [vmem:[%s5512_s1 + $0x1d0] sm:$0xff] }
  0xcb   : > { %1662 = vmatprep.mubr.f32.mxu1 %v633_v12  ;;  %3093 = vmatprep.subr.bf16.mxu0 %v3449_v3  ;;  %v637_v3 = vld [vmem:[%s5512_s1 + $0x500] sm:$0xff]  ;;  %v534_v12 = vld [vmem:[%s5512_s1 + $0x1c8] sm:$0xff] }
  0xcc   : > { %1193 = vperm.xlu1 %3352, %v915_v10   ;;  %v599_v10 = vld [vmem:[%s5512_s1 + $0x3d0] sm:$0xff] }
  0xcd   : > { %1583 = vmatmul.mubr.f32.gmra.mrb[30].mxu0 %v552_v14  ;;  %1663 = vmatmul.mubr.f32.gmra.mrb[30].mxu1 %v632_v15  ;;  %v540_v14 = vld [vmem:[%s5512_s1 + $0x1f8] sm:$0xff]  ;;  %v916_v15 = vld [vmem:[%s5513_s2 + $0x1b0] sm:$0xff] }
  0xce   : > { %3095 = vmatpush1.bf16.msra.mxu0 %v3094_v16  ;;  %1667 = vmatprep.mubr.f32.mxu1 %v638_v17  ;;  %v697_v16 = vld [vmem:[%s5512_s1 + $0x6e0] sm:$0xff]  ;;  %v539_v17 = vld [vmem:[%s5512_s1 + $0x1f0] sm:$0xff] }
  0xcf   : > { %1892 = vmatprep.mubr.f32.mxu0 %v480_v18  ;;  %v703_v18 = vld [vmem:[%s5512_s1 + $0x710] sm:$0xff]  ;;  %1198 = vperm.xlu0 %3351, %v916_v15   ;;  %v768_v15 = vld [vmem:[%s5512_s1 + $0x918] sm:$0xff] }
  0xd1   : > { %1668 = vmatmul.mubr.f32.gmra.mrb[32].mxu1 %v637_v3  ;;  %1893 = vmatmul.mubr.f32.vlgmr.msra.gmra.mrb[0].mxu0 %v479_v20  ;;  %v917_v3 = vld [vmem:[%s5513_s2 + $0x1b8] sm:$0xff]  ;;  %v702_v20 = vld [vmem:[%s5512_s1 + $0x708] sm:$0xff] }
  0xd2   : > { %1672 = vmatprep.mubr.f32.mxu1 %v643_v21  ;;  %1897 = vmatprep.mubr.f32.mxu0 %v485_v22  ;;  %v544_v21 = vld [vmem:[%s5512_s1 + $0x218] sm:$0xff] }
  0xd3   : > { %v708_v22 = vld [vmem:[%s5512_s1 + $0x738] sm:$0xff]  ;;  %1203 = vperm.xlu1 %3352, %v917_v3   ;;  %v615_v3 = vld [vmem:[%s5512_s1 + $0x450] sm:$0xff] }
  0xd5   : > { %1673 = vmatmul.mubr.f32.gmra.mrb[34].mxu1 %v642_v24  ;;  %1898 = vmatmul.mubr.f32.gmra.mrb[2].mxu0 %v484_v25  ;;  %v918_v24 = vld [vmem:[%s5513_s2 + $0x1c0] sm:$0xff]  ;;  %v707_v25 = vld [vmem:[%s5512_s1 + $0x730] sm:$0xff] }
  0xd6   : > { %1677 = vmatprep.mubr.f32.mxu1 %v648_v26  ;;  %1902 = vmatprep.mubr.f32.mxu0 %v490_v27  ;;  %v549_v26 = vld [vmem:[%s5512_s1 + $0x240] sm:$0xff] }
  0xd7   : > { %v713_v27 = vld [vmem:[%s5512_s1 + $0x760] sm:$0xff]  ;;  %1208 = vperm.xlu0 %3351, %v918_v24  }
  0xd8   : > { %v777_v24 = vld [vmem:[%s5512_s1 + $0x960] sm:$0xff] }
  0xd9   : > { %1678 = vmatmul.mubr.f32.gmra.mrb[36].mxu1 %v647_v29  ;;  %1903 = vmatmul.mubr.f32.gmra.mrb[4].mxu0 %v489_v30  ;;  %v919_v29 = vld [vmem:[%s5513_s2 + $0x1c8] sm:$0xff]  ;;  %v712_v30 = vld [vmem:[%s5512_s1 + $0x758] sm:$0xff] }
  0xda   : > { %1682 = vmatprep.mubr.f32.mxu1 %v653_v31  ;;  %1907 = vmatprep.mubr.f32.mxu0 %v495_v32  ;;  %v554_v31 = vld [vmem:[%s5512_s1 + $0x268] sm:$0xff] }
  0xdb   : > { %v718_v32 = vld [vmem:[%s5512_s1 + $0x788] sm:$0xff]  ;;  %1213 = vperm.xlu1 %3352, %v919_v29   ;;  %v624_v29 = vld [vmem:[%s5512_s1 + $0x498] sm:$0xff] }
  0xdd   : > { %1683 = vmatmul.mubr.f32.gmra.mrb[38].mxu1 %v652_v34  ;;  %1908 = vmatmul.mubr.f32.gmra.mrb[6].mxu0 %v494_v35  ;;  %v920_v34 = vld [vmem:[%s5513_s2 + $0x1d0] sm:$0xff]  ;;  %v717_v35 = vld [vmem:[%s5512_s1 + $0x780] sm:$0xff] }
  0xde   : > { %1687 = vmatprep.mubr.f32.mxu1 %v658_v36  ;;  %1912 = vmatprep.mubr.f32.mxu0 %v500_v37  ;;  %v559_v36 = vld [vmem:[%s5512_s1 + $0x290] sm:$0xff] }
  0xdf   : > { %v723_v37 = vld [vmem:[%s5512_s1 + $0x7b0] sm:$0xff]  ;;  %1218 = vperm.xlu0 %3351, %v920_v34   ;;  %v793_v34 = vld [vmem:[%s5512_s1 + $0x9e0] sm:$0xff] }
  0xe1   : > { %1688 = vmatmul.mubr.f32.gmra.mrb[40].mxu1 %v657_v39  ;;  %1913 = vmatmul.mubr.f32.gmra.mrb[8].mxu0 %v499_v40  ;;  %v921_v39 = vld [vmem:[%s5513_s2 + $0x1d8] sm:$0xff]  ;;  %v722_v40 = vld [vmem:[%s5512_s1 + $0x7a8] sm:$0xff] }
  0xe2   : > { %1692 = vmatprep.mubr.f32.mxu1 %v663_v41  ;;  %1917 = vmatprep.mubr.f32.mxu0 %v505_v42  ;;  %v564_v41 = vld [vmem:[%s5512_s1 + $0x2b8] sm:$0xff] }
  0xe3   : > { %v728_v42 = vld [vmem:[%s5512_s1 + $0x7d8] sm:$0xff]  ;;  %1223 = vperm.xlu1 %3352, %v921_v39   ;;  %v481_v39 = vld [vmem:[%s5512_s1 + $0x20] sm:$0xff] }
  0xe5   : > { %1693 = vmatmul.mubr.f32.gmra.mrb[42].mxu1 %v662_v44  ;;  %1918 = vmatmul.mubr.f32.gmra.mrb[10].mxu0 %v504_v45  ;;  %v922_v44 = vld [vmem:[%s5513_s2 + $0x1e0] sm:$0xff]  ;;  %v727_v45 = vld [vmem:[%s5512_s1 + $0x7d0] sm:$0xff] }
  0xe6   : > { %1697 = vmatprep.mubr.f32.mxu1 %v668_v46  ;;  %1922 = vmatprep.mubr.f32.mxu0 %v510_v47  ;;  %v569_v46 = vld [vmem:[%s5512_s1 + $0x2e0] sm:$0xff] }
  0xe7   : > { %v733_v47 = vld [vmem:[%s5512_s1 + $0x800] sm:$0xff]  ;;  %1228 = vperm.xlu0 %3351, %v922_v44   ;;  %v644_v44 = vld [vmem:[%s5512_s1 + $0x538] sm:$0xff] }
  0xe9   : > { %1698 = vmatmul.mubr.f32.gmra.mrb[44].mxu1 %v667_v49  ;;  %1923 = vmatmul.mubr.f32.gmra.mrb[12].mxu0 %v509_v50  ;;  %v923_v49 = vld [vmem:[%s5513_s2 + $0x1e8] sm:$0xff]  ;;  %v732_v50 = vld [vmem:[%s5512_s1 + $0x7f8] sm:$0xff] }
  0xea   : > { %1702 = vmatprep.mubr.f32.mxu1 %v673_v51  ;;  %1927 = vmatprep.mubr.f32.mxu0 %v515_v52  ;;  %v574_v51 = vld [vmem:[%s5512_s1 + $0x308] sm:$0xff] }
  0xeb   : > { %v738_v52 = vld [vmem:[%s5512_s1 + $0x828] sm:$0xff]  ;;  %1233 = vperm.xlu1 %3352, %v923_v49  }
  0xec   : > { %v506_v49 = vld [vmem:[%s5512_s1 + $0xe8] sm:$0xff] }
  0xed   : > { %1703 = vmatmul.mubr.f32.gmra.mrb[46].mxu1 %v672_v54  ;;  %1928 = vmatmul.mubr.f32.gmra.mrb[14].mxu0 %v514_v55  ;;  %v924_v54 = vld [vmem:[%s5513_s2 + $0x1f0] sm:$0xff]  ;;  %v737_v55 = vld [vmem:[%s5512_s1 + $0x820] sm:$0xff] }
  0xee   : > { %1707 = vmatprep.mubr.f32.mxu1 %v678_v56  ;;  %1932 = vmatprep.mubr.f32.mxu0 %v520_v57  ;;  %v579_v56 = vld [vmem:[%s5512_s1 + $0x330] sm:$0xff] }
  0xef   : > { %v743_v57 = vld [vmem:[%s5512_s1 + $0x850] sm:$0xff]  ;;  %1238 = vperm.xlu0 %3351, %v924_v54   ;;  %v660_v54 = vld [vmem:[%s5512_s1 + $0x5b8] sm:$0xff] }
  0xf1   : > { %1708 = vmatmul.mubr.f32.gmra.mrb[48].mxu1 %v677_v59  ;;  %1933 = vmatmul.mubr.f32.gmra.mrb[16].mxu0 %v519_v60  ;;  %v925_v59 = vld [vmem:[%s5513_s2 + $0x1f8] sm:$0xff]  ;;  %v742_v60 = vld [vmem:[%s5512_s1 + $0x848] sm:$0xff] }
  0xf2   : > { %1712 = vmatprep.mubr.f32.mxu1 %v683_v61  ;;  %1937 = vmatprep.mubr.f32.mxu0 %v525_v62  ;;  %v584_v61 = vld [vmem:[%s5512_s1 + $0x358] sm:$0xff] }
  0xf3   : > { %v748_v62 = vld [vmem:[%s5512_s1 + $0x878] sm:$0xff]  ;;  %1243 = vperm.xlu1 %3352, %v925_v59   ;;  %v531_v59 = vld [vmem:[%s5512_s1 + $0x1b0] sm:$0xff] }
  0xf5   : > { %1713 = vmatmul.mubr.f32.gmra.mrb[50].mxu1 %v682_v0  ;;  %1938 = vmatmul.mubr.f32.gmra.mrb[18].mxu0 %v524_v1  ;;  %v747_v0 = vld [vmem:[%s5512_s1 + $0x870] sm:$0xff]  ;;  %v589_v1 = vld [vmem:[%s5512_s1 + $0x380] sm:$0xff] }
  0xf6   : > { %1717 = vmatprep.mubr.f32.mxu1 %v688_v2  ;;  %1942 = vmatprep.mubr.f32.mxu0 %v530_v4  ;;  %v753_v2 = vld [vmem:[%s5512_s1 + $0x8a0] sm:$0xff]  ;;  %v595_v4 = vld [vmem:[%s5512_s1 + $0x3b0] sm:$0xff] }
  0xf9   : > { %1718 = vmatmul.mubr.f32.gmra.mrb[52].mxu1 %v687_v6  ;;  %1943 = vmatmul.mubr.f32.gmra.mrb[20].mxu0 %v529_v7  ;;  %v594_v6 = vld [vmem:[%s5512_s1 + $0x3a8] sm:$0xff] }
  0xfa   : > { %1722 = vmatprep.mubr.f32.mxu1 %v693_v8  ;;  %1947 = vmatprep.mubr.f32.mxu0 %v535_v9  ;;  %v758_v7 = vld [vmem:[%s5512_s1 + $0x8c8] sm:$0xff]  ;;  %v600_v8 = vld [vmem:[%s5512_s1 + $0x3d8] sm:$0xff]  ;;  %v757_v9 = vld [vmem:[%s5512_s1 + $0x8c0] sm:$0xff] }
  0xfd   : > { %1723 = vmatmul.mubr.f32.gmra.mrb[54].mxu1 %v692_v11  ;;  %1948 = vmatmul.mubr.f32.gmra.mrb[22].mxu0 %v534_v12  ;;  %v763_v11 = vld [vmem:[%s5512_s1 + $0x8f0] sm:$0xff]  ;;  %v605_v12 = vld [vmem:[%s5512_s1 + $0x400] sm:$0xff] }
  0xfe   : > { %1727 = vmatprep.mubr.f32.mxu1 %v698_v13  ;;  %1952 = vmatprep.mubr.f32.mxu0 %v540_v14  ;;  %v762_v13 = vld [vmem:[%s5512_s1 + $0x8e8] sm:$0xff]  ;;  %v604_v14 = vld [vmem:[%s5512_s1 + $0x3f8] sm:$0xff] }
 0x101   : > { %1728 = vmatmul.mubr.f32.gmra.mrb[56].mxu1 %v697_v16  ;;  %1953 = vmatmul.mubr.f32.gmra.mrb[24].mxu0 %v539_v17  ;;  %v610_v16 = vld [vmem:[%s5512_s1 + $0x428] sm:$0xff]  ;;  %v767_v17 = vld [vmem:[%s5512_s1 + $0x910] sm:$0xff] }
 0x102   : > { %1732 = vmatprep.mubr.f32.mxu1 %v703_v18  ;;  %1957 = vmatprep.mubr.f32.mxu0 %v545_v19  ;;  %v609_v18 = vld [vmem:[%s5512_s1 + $0x420] sm:$0xff] }
 0x103   : > { %v773_v19 = vld [vmem:[%s5512_s1 + $0x940] sm:$0xff] }
 0x105   : > { %1733 = vmatmul.mubr.f32.gmra.mrb[58].mxu1 %v702_v20  ;;  %1958 = vmatmul.mubr.f32.gmra.mrb[26].mxu0 %v544_v21  ;;  %v772_v20 = vld [vmem:[%s5512_s1 + $0x938] sm:$0xff]  ;;  %v614_v21 = vld [vmem:[%s5512_s1 + $0x448] sm:$0xff] }
 0x106   : > { %1737 = vmatprep.mubr.f32.mxu1 %v708_v22  ;;  %1962 = vmatprep.mubr.f32.mxu0 %v550_v23  ;;  %v778_v22 = vld [vmem:[%s5512_s1 + $0x968] sm:$0xff]  ;;  %v620_v23 = vld [vmem:[%s5512_s1 + $0x478] sm:$0xff] }
 0x109   : > { %1738 = vmatmul.mubr.f32.gmra.mrb[60].mxu1 %v707_v25  ;;  %1963 = vmatmul.mubr.f32.gmra.mrb[28].mxu0 %v549_v26  ;;  %v619_v25 = vld [vmem:[%s5512_s1 + $0x470] sm:$0xff] }
 0x10a   : > { %1742 = vmatprep.mubr.f32.mxu1 %v713_v27  ;;  %1967 = vmatprep.mubr.f32.mxu0 %v555_v28  ;;  %v783_v26 = vld [vmem:[%s5512_s1 + $0x990] sm:$0xff]  ;;  %v625_v27 = vld [vmem:[%s5512_s1 + $0x4a0] sm:$0xff]  ;;  %v782_v28 = vld [vmem:[%s5512_s1 + $0x988] sm:$0xff] }
 0x10d   : > { %1743 = vmatmul.mubr.f32.gmra.mrb[62].mxu1 %v712_v30  ;;  %1968 = vmatmul.mubr.f32.gmra.mrb[30].mxu0 %v554_v31  ;;  %v788_v30 = vld [vmem:[%s5512_s1 + $0x9b8] sm:$0xff]  ;;  %v630_v31 = vld [vmem:[%s5512_s1 + $0x4c8] sm:$0xff] }
 0x10e   : > { %1747 = vmatprep.mubr.f32.mxu1 %v718_v32  ;;  %1972 = vmatprep.mubr.f32.mxu0 %v560_v33  ;;  %v787_v32 = vld [vmem:[%s5512_s1 + $0x9b0] sm:$0xff]  ;;  %v629_v33 = vld [vmem:[%s5512_s1 + $0x4c0] sm:$0xff] }
 0x111   : > { %1748 = vmatmul.mubr.f32.gmra.mrb[64].mxu1 %v717_v35  ;;  %1973 = vmatmul.mubr.f32.gmra.mrb[32].mxu0 %v559_v36  ;;  %v635_v35 = vld [vmem:[%s5512_s1 + $0x4f0] sm:$0xff]  ;;  %v792_v36 = vld [vmem:[%s5512_s1 + $0x9d8] sm:$0xff] }
 0x112   : > { %1752 = vmatprep.mubr.f32.mxu1 %v723_v37  ;;  %1977 = vmatprep.mubr.f32.mxu0 %v565_v38  ;;  %v634_v37 = vld [vmem:[%s5512_s1 + $0x4e8] sm:$0xff]  ;;  %v640_v38 = vld [vmem:[%s5512_s1 + $0x518] sm:$0xff] }
 0x115   : > { %1753 = vmatmul.mubr.f32.gmra.mrb[66].mxu1 %v722_v40  ;;  %1978 = vmatmul.mubr.f32.gmra.mrb[34].mxu0 %v564_v41  ;;  %v639_v40 = vld [vmem:[%s5512_s1 + $0x510] sm:$0xff]  ;;  %v486_v41 = vld [vmem:[%s5512_s1 + $0x48] sm:$0xff] }
 0x116   : > { %1757 = vmatprep.mubr.f32.mxu1 %v728_v42  ;;  %1982 = vmatprep.mubr.f32.mxu0 %v570_v43  ;;  %v645_v42 = vld [vmem:[%s5512_s1 + $0x540] sm:$0xff]  ;;  %v491_v43 = vld [vmem:[%s5512_s1 + $0x70] sm:$0xff] }
 0x119   : > { %1758 = vmatmul.mubr.f32.gmra.mrb[68].mxu1 %v727_v45  ;;  %1983 = vmatmul.mubr.f32.gmra.mrb[36].mxu0 %v569_v46  ;;  %v496_v45 = vld [vmem:[%s5512_s1 + $0x98] sm:$0xff]  ;;  %v650_v46 = vld [vmem:[%s5512_s1 + $0x568] sm:$0xff] }
 0x11a   : > { %1762 = vmatprep.mubr.f32.mxu1 %v733_v47  ;;  %1987 = vmatprep.mubr.f32.mxu0 %v575_v48  ;;  %v501_v47 = vld [vmem:[%s5512_s1 + $0xc0] sm:$0xff] }
 0x11b   : > { %v649_v48 = vld [vmem:[%s5512_s1 + $0x560] sm:$0xff] }
 0x11d   : > { %1763 = vmatmul.mubr.f32.gmra.mrb[70].mxu1 %v732_v50  ;;  %1988 = vmatmul.mubr.f32.gmra.mrb[38].mxu0 %v574_v51  ;;  %v655_v50 = vld [vmem:[%s5512_s1 + $0x590] sm:$0xff] }
 0x11e   : > { %1767 = vmatprep.mubr.f32.mxu1 %v738_v52  ;;  %1992 = vmatprep.mubr.f32.mxu0 %v580_v53  ;;  %v511_v51 = vld [vmem:[%s5512_s1 + $0x110] sm:$0xff]  ;;  %v654_v52 = vld [vmem:[%s5512_s1 + $0x588] sm:$0xff]  ;;  %v516_v53 = vld [vmem:[%s5512_s1 + $0x138] sm:$0xff] }
 0x121   : > { %1768 = vmatmul.mubr.f32.gmra.mrb[72].mxu1 %v737_v55  ;;  %1993 = vmatmul.mubr.f32.gmra.mrb[40].mxu0 %v579_v56  ;;  %v521_v55 = vld [vmem:[%s5512_s1 + $0x160] sm:$0xff]  ;;  %v659_v56 = vld [vmem:[%s5512_s1 + $0x5b0] sm:$0xff] }
 0x122   : > { %1772 = vmatprep.mubr.f32.mxu1 %v743_v57  ;;  %1997 = vmatprep.mubr.f32.mxu0 %v585_v58  ;;  %v526_v57 = vld [vmem:[%s5512_s1 + $0x188] sm:$0xff]  ;;  %v665_v58 = vld [vmem:[%s5512_s1 + $0x5e0] sm:$0xff] }
 0x125   : > { %1773 = vmatmul.mubr.f32.gmra.mrb[74].mxu1 %v742_v60  ;;  %1998 = vmatmul.mubr.f32.gmra.mrb[42].mxu0 %v584_v61  ;;  %v664_v60 = vld [vmem:[%s5512_s1 + $0x5d8] sm:$0xff] }
 0x126   : > { %1777 = vmatprep.mubr.f32.mxu1 %v748_v62  ;;  %2002 = vmatprep.mubr.f32.mxu0 %v590_v63  ;;  %v536_v61 = vld [vmem:[%s5512_s1 + $0x1d8] sm:$0xff]  ;;  %v670_v62 = vld [vmem:[%s5512_s1 + $0x608] sm:$0xff]  ;;  %v541_v63 = vld [vmem:[%s5512_s1 + $0x200] sm:$0xff] }
 0x129   : > { %1778 = vmatmul.mubr.f32.gmra.mrb[76].mxu1 %v747_v0  ;;  %2003 = vmatmul.mubr.f32.gmra.mrb[44].mxu0 %v589_v1 }
 0x12a   : > { %1782 = vmatprep.mubr.f32.mxu1 %v753_v2  ;;  %2007 = vmatprep.mubr.f32.mxu0 %v595_v4  ;;  %v669_v2 = vld [vmem:[%s5512_s1 + $0x600] sm:$0xff]  ;;  %v546_v4 = vld [vmem:[%s5512_s1 + $0x228] sm:$0xff] }
 0x12d   : > { %1783 = vmatmul.mubr.f32.gmra.mrb[78].mxu1 %v752_v5  ;;  %2008 = vmatmul.mubr.f32.gmra.mrb[46].mxu0 %v594_v6  ;;  %v675_v5 = vld [vmem:[%s5512_s1 + $0x630] sm:$0xff] }
 0x12e   : > { %1787 = vmatprep.mubr.f32.mxu1 %v758_v7  ;;  %2012 = vmatprep.mubr.f32.mxu0 %v600_v8  ;;  %v551_v6 = vld [vmem:[%s5512_s1 + $0x250] sm:$0xff] }
 0x131   : > { %1788 = vmatmul.mubr.f32.gmra.mrb[80].mxu1 %v757_v9  ;;  %2013 = vmatmul.mubr.f32.gmra.mrb[48].mxu0 %v599_v10  ;;  %v674_v9 = vld [vmem:[%s5512_s1 + $0x628] sm:$0xff]  ;;  %v556_v10 = vld [vmem:[%s5512_s1 + $0x278] sm:$0xff] }
 0x132   : > { %1792 = vmatprep.mubr.f32.mxu1 %v763_v11  ;;  %2017 = vmatprep.mubr.f32.mxu0 %v605_v12  ;;  %v680_v11 = vld [vmem:[%s5512_s1 + $0x658] sm:$0xff]  ;;  %v561_v12 = vld [vmem:[%s5512_s1 + $0x2a0] sm:$0xff] }
 0x135   : > { %1793 = vmatmul.mubr.f32.gmra.mrb[82].mxu1 %v762_v13  ;;  %2018 = vmatmul.mubr.f32.gmra.mrb[50].mxu0 %v604_v14 }
 0x136   : > { %1797 = vmatprep.mubr.f32.mxu1 %v768_v15  ;;  %2022 = vmatprep.mubr.f32.mxu0 %v610_v16  ;;  %v679_v15 = vld [vmem:[%s5512_s1 + $0x650] sm:$0xff]  ;;  %v566_v16 = vld [vmem:[%s5512_s1 + $0x2c8] sm:$0xff] }
 0x139   : > { %1798 = vmatmul.mubr.f32.gmra.mrb[84].mxu1 %v767_v17  ;;  %2023 = vmatmul.mubr.f32.gmra.mrb[52].mxu0 %v609_v18  ;;  %v685_v17 = vld [vmem:[%s5512_s1 + $0x680] sm:$0xff]  ;;  %v571_v18 = vld [vmem:[%s5512_s1 + $0x2f0] sm:$0xff] }
 0x13a   : > { %1802 = vmatprep.mubr.f32.mxu1 %v773_v19  ;;  %2027 = vmatprep.mubr.f32.mxu0 %v615_v3 }
 0x13d   : > { %1803 = vmatmul.mubr.f32.gmra.mrb[86].mxu1 %v772_v20  ;;  %2028 = vmatmul.mubr.f32.gmra.mrb[54].mxu0 %v614_v21  ;;  %v684_v20 = vld [vmem:[%s5512_s1 + $0x678] sm:$0xff] }
 0x13e   : > { %1807 = vmatprep.mubr.f32.mxu1 %v778_v22  ;;  %2032 = vmatprep.mubr.f32.mxu0 %v620_v23  ;;  %v576_v21 = vld [vmem:[%s5512_s1 + $0x318] sm:$0xff]  ;;  %v690_v22 = vld [vmem:[%s5512_s1 + $0x6a8] sm:$0xff]  ;;  %v581_v23 = vld [vmem:[%s5512_s1 + $0x340] sm:$0xff] }
 0x141   : > { %1808 = vmatmul.mubr.f32.gmra.mrb[88].mxu1 %v777_v24  ;;  %2033 = vmatmul.mubr.f32.gmra.mrb[56].mxu0 %v619_v25 }
 0x142   : > { %1812 = vmatprep.mubr.f32.mxu1 %v783_v26  ;;  %2037 = vmatprep.mubr.f32.mxu0 %v625_v27  ;;  %v689_v26 = vld [vmem:[%s5512_s1 + $0x6a0] sm:$0xff]  ;;  %v586_v27 = vld [vmem:[%s5512_s1 + $0x368] sm:$0xff] }
 0x145   : > { %1813 = vmatmul.mubr.f32.gmra.mrb[90].mxu1 %v782_v28  ;;  %2038 = vmatmul.mubr.f32.gmra.mrb[58].mxu0 %v624_v29  ;;  %v695_v28 = vld [vmem:[%s5512_s1 + $0x6d0] sm:$0xff] }
 0x146   : > { %1817 = vmatprep.mubr.f32.mxu1 %v788_v30  ;;  %2042 = vmatprep.mubr.f32.mxu0 %v630_v31  ;;  %v591_v29 = vld [vmem:[%s5512_s1 + $0x390] sm:$0xff] }
 0x149   : > { %1818 = vmatmul.mubr.f32.gmra.mrb[92].mxu1 %v787_v32  ;;  %2043 = vmatmul.mubr.f32.gmra.mrb[60].mxu0 %v629_v33  ;;  %v694_v32 = vld [vmem:[%s5512_s1 + $0x6c8] sm:$0xff]  ;;  %v596_v33 = vld [vmem:[%s5512_s1 + $0x3b8] sm:$0xff] }
 0x14a   : > { %1822 = vmatprep.mubr.f32.mxu1 %v793_v34  ;;  %2047 = vmatprep.mubr.f32.mxu0 %v635_v35  ;;  %v700_v34 = vld [vmem:[%s5512_s1 + $0x6f8] sm:$0xff]  ;;  %v601_v35 = vld [vmem:[%s5512_s1 + $0x3e0] sm:$0xff] }
 0x14d   : > { %1823 = vmatmul.mubr.f32.gmra.mrb[94].mxu1 %v792_v36  ;;  %2048 = vmatmul.mubr.f32.gmra.mrb[62].mxu0 %v634_v37 }
 0x14e   : > { %2052 = vmatprep.mubr.f32.mxu0 %v640_v38  ;;  %2904 = vmatprep.mubr.msk.f32.mxu1 %vm1246_vm1, %v481_v39  ;;  %v699_v38 = vld [vmem:[%s5512_s1 + $0x6f0] sm:$0xff]  ;;  %v606_v39 = vld [vmem:[%s5512_s1 + $0x408] sm:$0xff] }
 0x151   : > { %2053 = vmatmul.mubr.f32.gmra.mrb[64].mxu0 %v639_v40  ;;  %2905 = vmatmul.mubr.msk.f32.vlgmr.msra.gmra.mrb[96].mxu1 %vm1246_vm1, %v486_v41  ;;  %v705_v40 = vld [vmem:[%s5512_s1 + $0x720] sm:$0xff]  ;;  %v611_v41 = vld [vmem:[%s5512_s1 + $0x430] sm:$0xff] }
 0x152   : > { %2057 = vmatprep.mubr.f32.mxu0 %v645_v42  ;;  %2907 = vmatprep.mubr.msk.f32.mxu1 %vm1246_vm1, %v491_v43 }
 0x155   : > { %2058 = vmatmul.mubr.f32.gmra.mrb[66].mxu0 %v644_v44  ;;  %2908 = vmatmul.mubr.msk.f32.gmra.mrb[98].mxu1 %vm1246_vm1, %v496_v45  ;;  %v704_v44 = vld [vmem:[%s5512_s1 + $0x718] sm:$0xff] }
 0x156   : > { %2062 = vmatprep.mubr.f32.mxu0 %v650_v46  ;;  %2910 = vmatprep.mubr.msk.f32.mxu1 %vm1246_vm1, %v501_v47  ;;  %v616_v45 = vld [vmem:[%s5512_s1 + $0x458] sm:$0xff]  ;;  %v710_v46 = vld [vmem:[%s5512_s1 + $0x748] sm:$0xff]  ;;  %v621_v47 = vld [vmem:[%s5512_s1 + $0x480] sm:$0xff] }
 0x159   : > { %2063 = vmatmul.mubr.f32.gmra.mrb[68].mxu0 %v649_v48  ;;  %2911 = vmatmul.mubr.msk.f32.gmra.mrb[100].mxu1 %vm1246_vm1, %v506_v49 }
 0x15a   : > { %2067 = vmatprep.mubr.f32.mxu0 %v655_v50  ;;  %2913 = vmatprep.mubr.msk.f32.mxu1 %vm1246_vm1, %v511_v51  ;;  %v709_v50 = vld [vmem:[%s5512_s1 + $0x740] sm:$0xff]  ;;  %v626_v51 = vld [vmem:[%s5512_s1 + $0x4a8] sm:$0xff] }
 0x15d   : > { %2068 = vmatmul.mubr.f32.gmra.mrb[70].mxu0 %v654_v52  ;;  %2914 = vmatmul.mubr.msk.f32.gmra.mrb[102].mxu1 %vm1246_vm1, %v516_v53  ;;  %v715_v52 = vld [vmem:[%s5512_s1 + $0x770] sm:$0xff] }
 0x15e   : > { %2072 = vmatprep.mubr.f32.mxu0 %v660_v54  ;;  %2916 = vmatprep.mubr.msk.f32.mxu1 %vm1246_vm1, %v521_v55  ;;  %v631_v53 = vld [vmem:[%s5512_s1 + $0x4d0] sm:$0xff] }
 0x161   : > { %2073 = vmatmul.mubr.f32.gmra.mrb[72].mxu0 %v659_v56  ;;  %2917 = vmatmul.mubr.msk.f32.gmra.mrb[104].mxu1 %vm1246_vm1, %v526_v57  ;;  %v714_v56 = vld [vmem:[%s5512_s1 + $0x768] sm:$0xff]  ;;  %v636_v57 = vld [vmem:[%s5512_s1 + $0x4f8] sm:$0xff] }
 0x162   : > { %2077 = vmatprep.mubr.f32.mxu0 %v665_v58  ;;  %2919 = vmatprep.mubr.msk.f32.mxu1 %vm1246_vm1, %v531_v59  ;;  %v720_v58 = vld [vmem:[%s5512_s1 + $0x798] sm:$0xff]  ;;  %v641_v59 = vld [vmem:[%s5512_s1 + $0x520] sm:$0xff] }
 0x164   : > { %v4672_v0 = vpop.f32.mrb[0].mxu1 }
 0x165   : > { %2078 = vmatmul.mubr.f32.gmra.mrb[74].mxu0 %v664_v60  ;;  %2920 = vmatmul.mubr.msk.f32.gmra.mrb[106].mxu1 %vm1246_vm1, %v536_v61  ;;  %v1591_v1 = vpop.f32.mrb[1].mxu1 }
 0x166   : > { %2082 = vmatprep.mubr.f32.mxu0 %v670_v62  ;;  %2922 = vmatprep.mubr.msk.f32.mxu1 %vm1246_vm1, %v541_v63  ;;  %v719_v62 = vld [vmem:[%s5512_s1 + $0x790] sm:$0xff]  ;;  %v646_v63 = vld [vmem:[%s5512_s1 + $0x548] sm:$0xff]  ;;  %v725_v1 = vld [vmem:[%s5512_s1 + $0x7c0] sm:$0xff] }
 0x168   : > { %v4688_v7 = vpop.f32.mrb[2].mxu1 }
 0x169   : > { %2083 = vmatmul.mubr.f32.gmra.mrb[76].mxu0 %v669_v2  ;;  %2923 = vmatmul.mubr.msk.f32.gmra.mrb[108].mxu1 %vm1246_vm1, %v546_v4  ;;  %v1596_v8 = vpop.f32.mrb[3].mxu1  ;;  %v651_v2 = vld [vmem:[%s5512_s1 + $0x570] sm:$0xff] }
 0x16a   : > { %2087 = vmatprep.mubr.f32.mxu0 %v675_v5  ;;  %2925 = vmatprep.mubr.msk.f32.mxu1 %vm1246_vm1, %v551_v6  ;;  %v724_v6 = vld [vmem:[%s5512_s1 + $0x7b8] sm:$0xff] }
 0x16b   : > { %v656_v8 = vld [vmem:[%s5512_s1 + $0x598] sm:$0xff] }
 0x16c   : > { %v4704_v13 = vpop.f32.mrb[4].mxu1 }
 0x16d   : > { %2088 = vmatmul.mubr.f32.gmra.mrb[78].mxu0 %v674_v9  ;;  %2926 = vmatmul.mubr.msk.f32.gmra.mrb[110].mxu1 %vm1246_vm1, %v556_v10  ;;  %v1601_v14 = vpop.f32.mrb[5].mxu1  ;;  %v730_v9 = vld [vmem:[%s5512_s1 + $0x7e8] sm:$0xff]  ;;  %v661_v10 = vld [vmem:[%s5512_s1 + $0x5c0] sm:$0xff] }
 0x16e   : > { %2092 = vmatprep.mubr.f32.mxu0 %v680_v11  ;;  %2928 = vmatprep.mubr.msk.f32.mxu1 %vm1246_vm1, %v561_v12  ;;  %v729_v14 = vld [vmem:[%s5512_s1 + $0x7e0] sm:$0xff] }
 0x170   : > { %v4720_v19 = vpop.f32.mrb[6].mxu1 }
 0x171   : > { %2093 = vmatmul.mubr.f32.gmra.mrb[80].mxu0 %v679_v15  ;;  %2929 = vmatmul.mubr.msk.f32.gmra.mrb[112].mxu1 %vm1246_vm1, %v566_v16  ;;  %v1606_v3 = vpop.f32.mrb[7].mxu1  ;;  %v666_v15 = vld [vmem:[%s5512_s1 + $0x5e8] sm:$0xff]  ;;  %v735_v16 = vld [vmem:[%s5512_s1 + $0x810] sm:$0xff] }
 0x172   : > { %2097 = vmatprep.mubr.f32.mxu0 %v685_v17  ;;  %2931 = vmatprep.mubr.msk.f32.mxu1 %vm1246_vm1, %v571_v18  ;;  %v671_v17 = vld [vmem:[%s5512_s1 + $0x610] sm:$0xff] }
 0x174   : > { %v4736_v24 = vpop.f32.mrb[8].mxu1 }
 0x175   : > { %2098 = vmatmul.mubr.f32.gmra.mrb[82].mxu0 %v684_v20  ;;  %2932 = vmatmul.mubr.msk.f32.gmra.mrb[114].mxu1 %vm1246_vm1, %v576_v21  ;;  %v1611_v25 = vpop.f32.mrb[9].mxu1  ;;  %v734_v20 = vld [vmem:[%s5512_s1 + $0x808] sm:$0xff]  ;;  %v676_v21 = vld [vmem:[%s5512_s1 + $0x638] sm:$0xff] }
 0x176   : > { %2102 = vmatprep.mubr.f32.mxu0 %v690_v22  ;;  %2934 = vmatprep.mubr.msk.f32.mxu1 %vm1246_vm1, %v581_v23  ;;  %v740_v22 = vld [vmem:[%s5512_s1 + $0x838] sm:$0xff]  ;;  %v681_v23 = vld [vmem:[%s5512_s1 + $0x660] sm:$0xff] }
 0x178   : > { %v4752_v30 = vpop.f32.mrb[10].mxu1 }
 0x179   : > { %2103 = vmatmul.mubr.f32.gmra.mrb[84].mxu0 %v689_v26  ;;  %2935 = vmatmul.mubr.msk.f32.gmra.mrb[116].mxu1 %vm1246_vm1, %v586_v27  ;;  %v1616_v31 = vpop.f32.mrb[11].mxu1  ;;  %v739_v27 = vld [vmem:[%s5512_s1 + $0x830] sm:$0xff] }
 0x17a   : > { %2107 = vmatprep.mubr.f32.mxu0 %v695_v28  ;;  %2937 = vmatprep.mubr.msk.f32.mxu1 %vm1246_vm1, %v591_v29  ;;  %v686_v28 = vld [vmem:[%s5512_s1 + $0x688] sm:$0xff]  ;;  %v745_v29 = vld [vmem:[%s5512_s1 + $0x860] sm:$0xff]  ;;  %v691_v31 = vld [vmem:[%s5512_s1 + $0x6b0] sm:$0xff] }
 0x17c   : > { %v4768_v36 = vpop.f32.mrb[12].mxu1 }
 0x17d   : > { %2108 = vmatmul.mubr.f32.gmra.mrb[86].mxu0 %v694_v32  ;;  %2938 = vmatmul.mubr.msk.f32.gmra.mrb[118].mxu1 %vm1246_vm1, %v596_v33  ;;  %v1621_v37 = vpop.f32.mrb[13].mxu1  ;;  %v4914_v33 = vpop.permute.xlu0 %928 }
 0x17e   : > { %2112 = vmatprep.mubr.f32.mxu0 %v700_v34  ;;  %2940 = vmatprep.mubr.msk.f32.mxu1 %vm1246_vm1, %v601_v35  ;;  %v744_v35 = vld [vmem:[%s5512_s1 + $0x858] sm:$0xff] }
 0x17f   : > { %v696_v37 = vld [vmem:[%s5512_s1 + $0x6d8] sm:$0xff] }
 0x180   : > { %v4784_v42 = vpop.f32.mrb[14].mxu1 }
 0x181   : > { %2113 = vmatmul.mubr.f32.gmra.mrb[88].mxu0 %v699_v38  ;;  %2941 = vmatmul.mubr.msk.f32.gmra.mrb[120].mxu1 %vm1246_vm1, %v606_v39  ;;  %v1626_v43 = vpop.f32.mrb[15].mxu1  ;;  %v4924_v38 = vpop.permute.xlu1 %938  ;;  %v750_v39 = vld [vmem:[%s5512_s1 + $0x888] sm:$0xff] }
 0x182   : > { %2117 = vmatprep.mubr.f32.mxu0 %v705_v40  ;;  %2943 = vmatprep.mubr.msk.f32.mxu1 %vm1246_vm1, %v611_v41  ;;  %v701_v40 = vld [vmem:[%s5512_s1 + $0x700] sm:$0xff] }
 0x184   : > { %v4800_v48 = vpop.f32.mrb[16].mxu1 }
 0x185   : > { %2118 = vmatmul.mubr.f32.gmra.mrb[90].mxu0 %v704_v44  ;;  %2944 = vmatmul.mubr.msk.f32.gmra.mrb[122].mxu1 %vm1246_vm1, %v616_v45  ;;  %v1631_v49 = vpop.f32.mrb[17].mxu1 }
 0x186   : > { %2122 = vmatprep.mubr.f32.mxu0 %v710_v46  ;;  %2946 = vmatprep.mubr.msk.f32.mxu1 %vm1246_vm1, %v621_v47  ;;  %v749_v46 = vld [vmem:[%s5512_s1 + $0x880] sm:$0xff]  ;;  %v706_v47 = vld [vmem:[%s5512_s1 + $0x728] sm:$0xff]  ;;  %v4944_v49 = vpop.permute.xlu0 %933 }
 0x188   : > { %v4816_v54 = vpop.f32.mrb[18].mxu1 }
 0x189   : > { %2123 = vmatmul.mubr.f32.gmra.mrb[92].mxu0 %v709_v50  ;;  %2947 = vmatmul.mubr.msk.f32.gmra.mrb[124].mxu1 %vm1246_vm1, %v626_v51  ;;  %v1636_v55 = vpop.f32.mrb[19].mxu1  ;;  %v755_v50 = vld [vmem:[%s5512_s1 + $0x8b0] sm:$0xff] }
 0x18a   : > { %2127 = vmatprep.mubr.f32.mxu0 %v715_v52  ;;  %2949 = vmatprep.mubr.msk.f32.mxu1 %vm1246_vm1, %v631_v53  ;;  %v711_v51 = vld [vmem:[%s5512_s1 + $0x750] sm:$0xff] }
 0x18c   : > { %v4832_v60 = vpop.f32.mrb[20].mxu1 }
 0x18d   : > { %2128 = vmatmul.mubr.f32.gmra.mrb[94].mxu0 %v714_v56  ;;  %2950 = vmatmul.mubr.msk.f32.gmra.mrb[126].mxu1 %vm1246_vm1, %v636_v57  ;;  %v1641_v61 = vpop.f32.mrb[21].mxu1  ;;  %v754_v57 = vld [vmem:[%s5512_s1 + $0x8a8] sm:$0xff] }
 0x18e   : > { %2132 = vmatprep.mubr.f32.mxu0 %v720_v58  ;;  %2952 = vmatprep.mubr.msk.f32.mxu1 %vm1246_vm1, %v641_v59  ;;  %v716_v58 = vld [vmem:[%s5512_s1 + $0x778] sm:$0xff]  ;;  %v4964_v59 = vpop.permute.xlu1 %943 }
 0x18f   : > { %v760_v61 = vld [vmem:[%s5512_s1 + $0x8d8] sm:$0xff] }
 0x190   : > { %v4848_v4 = vpop.f32.mrb[22].mxu1 }
 0x191   : > { %2133 = vmatmul.mubr.f32.gmra.mrb[96].mxu0 %v719_v62  ;;  %2953 = vmatmul.mubr.msk.f32.gmra.mrb[128].mxu1 %vm1246_vm1, %v646_v63  ;;  %v1646_v5 = vpop.f32.mrb[23].mxu1  ;;  %v721_v62 = vld [vmem:[%s5512_s1 + $0x7a0] sm:$0xff] }
 0x192   : > { %2137 = vmatprep.mubr.f32.mxu0 %v725_v1  ;;  %2955 = vmatprep.mubr.msk.f32.mxu1 %vm1246_vm1, %v651_v2 }
 0x194   : > { %v4864_v11 = vpop.f32.mrb[24].mxu1 }
 0x195   : > { %2138 = vmatmul.mubr.f32.gmra.mrb[98].mxu0 %v724_v6  ;;  %2956 = vmatmul.mubr.msk.f32.gmra.mrb[130].mxu1 %vm1246_vm1, %v656_v8  ;;  %v1651_v12 = vpop.f32.mrb[25].mxu1  ;;  %v759_v6 = vld [vmem:[%s5512_s1 + $0x8d0] sm:$0xff]  ;;  %v726_v8 = vld [vmem:[%s5512_s1 + $0x7c8] sm:$0xff] }
 0x196   : > { %2142 = vmatprep.mubr.f32.mxu0 %v730_v9  ;;  %2958 = vmatprep.mubr.msk.f32.mxu1 %vm1246_vm1, %v661_v10  ;;  %v4984_v9 = vpop.permute.xlu0 %948  ;;  %v765_v10 = vld [vmem:[%s5512_s1 + $0x900] sm:$0xff]  ;;  %v731_v12 = vld [vmem:[%s5512_s1 + $0x7f0] sm:$0xff] }
 0x198   : > { %v4880_v18 = vpop.f32.mrb[26].mxu1 }
 0x199   : > { %2143 = vmatmul.mubr.f32.gmra.mrb[100].mxu0 %v729_v14  ;;  %2959 = vmatmul.mubr.msk.f32.gmra.mrb[132].mxu1 %vm1246_vm1, %v666_v15  ;;  %v1656_v3 = vpop.f32.mrb[27].mxu1 }
 0x19a   : > { %2147 = vmatprep.mubr.f32.mxu0 %v735_v16  ;;  %2961 = vmatprep.mubr.msk.f32.mxu1 %vm1246_vm1, %v671_v17  ;;  %v764_v3 = vld [vmem:[%s5512_s1 + $0x8f8] sm:$0xff] }
 0x19c   : > { %v4896_v25 = vpop.f32.mrb[28].mxu1 }
 0x19d   : > { %2148 = vmatmul.mubr.f32.gmra.mrb[102].mxu0 %v734_v20  ;;  %2962 = vmatmul.mubr.msk.f32.gmra.mrb[134].mxu1 %vm1246_vm1, %v676_v21  ;;  %v1661_v26 = vpop.f32.mrb[29].mxu1  ;;  %v736_v20 = vld [vmem:[%s5512_s1 + $0x818] sm:$0xff]  ;;  %v5004_v21 = vpop.permute.xlu1 %953 }
 0x19e   : > { %2152 = vmatprep.mubr.f32.mxu0 %v740_v22  ;;  %2964 = vmatprep.mubr.msk.f32.mxu1 %vm1246_vm1, %v681_v23  ;;  %v770_v22 = vld [vmem:[%s5512_s1 + $0x928] sm:$0xff]  ;;  %v741_v23 = vld [vmem:[%s5512_s1 + $0x840] sm:$0xff] }
 0x1a0   : > { %v4912_v32 = vpop.f32.mrb[30].mxu1 }
 0x1a1   : > { %2153 = vmatmul.mubr.f32.gmra.mrb[104].mxu0 %v739_v27  ;;  %2965 = vmatmul.mubr.msk.f32.gmra.mrb[136].mxu1 %vm1246_vm1, %v686_v28  ;;  %v1666_v34 = vpop.f32.mrb[31].mxu1 }
 0x1a2   : > { %2157 = vmatprep.mubr.f32.mxu0 %v745_v29  ;;  %2967 = vmatprep.mubr.msk.f32.mxu1 %vm1246_vm1, %v691_v31  ;;  %v769_v31 = vld [vmem:[%s5512_s1 + $0x920] sm:$0xff]  ;;  %v746_v34 = vld [vmem:[%s5512_s1 + $0x868] sm:$0xff] }
 0x1a4   : > { %v4932_v41 = vpop.f32.mrb[0].mxu0  ;;  %v4934_v43 = vpop.f32.mrb[32].mxu1 }
 0x1a5   : > { %v1896_v44 = vpop.f32.mrb[1].mxu0  ;;  %2158 = vmatmul.mubr.f32.gmra.mrb[106].mxu0 %v744_v35  ;;  %2968 = vmatmul.mubr.msk.f32.gmra.mrb[138].mxu1 %vm1246_vm1, %v696_v37  ;;  %v1671_v45 = vpop.f32.mrb[33].mxu1  ;;  %v775_v37 = vld [vmem:[%s5512_s1 + $0x950] sm:$0xff] }
 0x1a6   : > { %2162 = vmatprep.mubr.f32.mxu0 %v750_v39  ;;  %2970 = vmatprep.mubr.msk.f32.mxu1 %vm1246_vm1, %v701_v40  ;;  %v5024_v35 = vpop.permute.xlu0 %958  ;;  %v751_v39 = vld [vmem:[%s5512_s1 + $0x890] sm:$0xff] }
 0x1a8   : > { %v4952_v52 = vpop.f32.mrb[2].mxu0  ;;  %v4954_v53 = vpop.f32.mrb[34].mxu1 }
 0x1a9   : > { %v1901_v55 = vpop.f32.mrb[3].mxu0  ;;  %2163 = vmatmul.mubr.f32.gmra.mrb[108].mxu0 %v749_v46  ;;  %2971 = vmatmul.mubr.msk.f32.gmra.mrb[140].mxu1 %vm1246_vm1, %v706_v47  ;;  %v1676_v56 = vpop.f32.mrb[35].mxu1  ;;  %v774_v47 = vld [vmem:[%s5512_s1 + $0x948] sm:$0xff] }
 0x1aa   : > { %2167 = vmatprep.mubr.f32.mxu0 %v755_v50  ;;  %2973 = vmatprep.mubr.msk.f32.mxu1 %vm1246_vm1, %v711_v51  ;;  %v756_v50 = vld [vmem:[%s5512_s1 + $0x8b8] sm:$0xff]  ;;  %v5044_v51 = vpop.permute.xlu1 %963  ;;  %v761_v56 = vld [vmem:[%s5512_s1 + $0x8e0] sm:$0xff] }
 0x1ab   : > { %v780_v55 = vld [vmem:[%s5512_s1 + $0x978] sm:$0xff] }
 0x1ac   : > { %v4972_v63 = vpop.f32.mrb[4].mxu0  ;;  %v4974_v1 = vpop.f32.mrb[36].mxu1 }
 0x1ad   : > { %v1906_v2 = vpop.f32.mrb[5].mxu0  ;;  %2168 = vmatmul.mubr.f32.gmra.mrb[110].mxu0 %v754_v57  ;;  %2974 = vmatmul.mubr.msk.f32.gmra.mrb[142].mxu1 %vm1246_vm1, %v716_v58  ;;  %v1681_v5 = vpop.f32.mrb[37].mxu1 }
 0x1ae   : > { %2172 = vmatprep.mubr.f32.mxu0 %v760_v61  ;;  %2976 = vmatprep.mubr.msk.f32.mxu1 %vm1246_vm1, %v721_v62  ;;  %v779_v2 = vld [vmem:[%s5512_s1 + $0x970] sm:$0xff]  ;;  %v766_v5 = vld [vmem:[%s5512_s1 + $0x908] sm:$0xff] }
 0x1b0   : > { %v4992_v14 = vpop.f32.mrb[6].mxu0  ;;  %v4994_v15 = vpop.f32.mrb[38].mxu1 }
 0x1b1   : > { %v1911_v16 = vpop.f32.mrb[7].mxu0  ;;  %2173 = vmatmul.mubr.f32.gmra.mrb[112].mxu0 %v759_v6  ;;  %2977 = vmatmul.mubr.msk.f32.gmra.mrb[144].mxu1 %vm1246_vm1, %v726_v8  ;;  %v1686_v17 = vpop.f32.mrb[39].mxu1  ;;  %v785_v8 = vld [vmem:[%s5512_s1 + $0x9a0] sm:$0xff] }
 0x1b2   : > { %2177 = vmatprep.mubr.f32.mxu0 %v765_v10  ;;  %2979 = vmatprep.mubr.msk.f32.mxu1 %vm1246_vm1, %v731_v12  ;;  %v5064_v6 = vpop.permute.xlu0 %968  ;;  %v771_v10 = vld [vmem:[%s5512_s1 + $0x930] sm:$0xff] }
 0x1b4   : > { %v5012_v26 = vpop.f32.mrb[8].mxu0  ;;  %v5014_v27 = vpop.f32.mrb[40].mxu1 }
 0x1b5   : > { %v1916_v28 = vpop.f32.mrb[9].mxu0  ;;  %2178 = vmatmul.mubr.f32.gmra.mrb[114].mxu0 %v764_v3  ;;  %2980 = vmatmul.mubr.msk.f32.gmra.mrb[146].mxu1 %vm1246_vm1, %v736_v20  ;;  %v1691_v29 = vpop.f32.mrb[41].mxu1  ;;  %v784_v20 = vld [vmem:[%s5512_s1 + $0x998] sm:$0xff] }
 0x1b6   : > { %2182 = vmatprep.mubr.f32.mxu0 %v770_v22  ;;  %2982 = vmatprep.mubr.msk.f32.mxu1 %vm1246_vm1, %v741_v23  ;;  %v776_v22 = vld [vmem:[%s5512_s1 + $0x958] sm:$0xff]  ;;  %v5084_v23 = vpop.permute.xlu1 %973  ;;  %v790_v28 = vld [vmem:[%s5512_s1 + $0x9c8] sm:$0xff]  ;;  %v781_v29 = vld [vmem:[%s5512_s1 + $0x980] sm:$0xff] }
 0x1b8   : > { %v5032_v40 = vpop.f32.mrb[10].mxu0  ;;  %v5034_v44 = vpop.f32.mrb[42].mxu1 }
 0x1b9   : > { %v1921_v45 = vpop.f32.mrb[11].mxu0  ;;  %2183 = vmatmul.mubr.f32.gmra.mrb[116].mxu0 %v769_v31  ;;  %2983 = vmatmul.mubr.msk.f32.gmra.mrb[148].mxu1 %vm1246_vm1, %v746_v34  ;;  %v1696_v46 = vpop.f32.mrb[43].mxu1 }
 0x1ba   : > { %2187 = vmatprep.mubr.f32.mxu0 %v775_v37  ;;  %2985 = vmatprep.mubr.msk.f32.mxu1 %vm1246_vm1, %v751_v39  ;;  %v789_v45 = vld [vmem:[%s5512_s1 + $0x9c0] sm:$0xff]  ;;  %v786_v46 = vld [vmem:[%s5512_s1 + $0x9a8] sm:$0xff] }
 0x1bc   : > { %v5052_v57 = vpop.f32.mrb[12].mxu0  ;;  %v5054_v58 = vpop.f32.mrb[44].mxu1 }
 0x1bd   : > { %v1926_v61 = vpop.f32.mrb[13].mxu0  ;;  %2188 = vmatmul.mubr.f32.gmra.mrb[118].mxu0 %v774_v47  ;;  %2986 = vmatmul.mubr.msk.f32.gmra.mrb[150].mxu1 %vm1246_vm1, %v756_v50  ;;  %v1701_v62 = vpop.f32.mrb[45].mxu1  ;;  %v795_v50 = vld [vmem:[%s5512_s1 + $0x9f0] sm:$0xff] }
 0x1be   : > { %2192 = vmatprep.mubr.f32.mxu0 %v780_v55  ;;  %2988 = vmatprep.mubr.msk.f32.mxu1 %vm1246_vm1, %v761_v56  ;;  %v5104_v47 = vpop.permute.xlu0 %978  ;;  %v791_v55 = vld [vmem:[%s5512_s1 + $0x9d0] sm:$0xff] }
 0x1c0   : > { %v5072_v12 = vpop.f32.mrb[14].mxu0  ;;  %v5074_v16 = vpop.f32.mrb[46].mxu1 }
 0x1c1   : > { %5518 = vst [vmem:[#allocation6_spill] sm:$0xff] %v5074_v16  ;;  %v1931_v17 = vpop.f32.mrb[15].mxu0  ;;  %2193 = vmatmul.mubr.f32.gmra.mrb[120].mxu0 %v779_v2  ;;  %2989 = vmatmul.mubr.msk.f32.gmra.mrb[152].mxu1 %vm1246_vm1, %v766_v5  ;;  %v1706_v3 = vpop.f32.mrb[47].mxu1  ;;  %v794_v5 = vld [vmem:[%s5512_s1 + $0x9e8] sm:$0xff] }
 0x1c2   : > { %2197 = vmatprep.mubr.f32.mxu0 %v785_v8  ;;  %2991 = vmatprep.mubr.msk.f32.mxu1 %vm1246_vm1, %v771_v10  ;;  %v796_v8 = vld [vmem:[%s5512_s1 + $0x9f8] sm:$0xff]  ;;  %v5124_v10 = vpop.permute.xlu1 %983 }
 0x1c4   : > { %v5092_v31 = vpop.f32.mrb[16].mxu0  ;;  %v5094_v34 = vpop.f32.mrb[48].mxu1 }
 0x1c5   : > { %5519 = vst [vmem:[#allocation7_spill] sm:$0xff] %v5094_v34  ;;  %v1936_v37 = vpop.f32.mrb[17].mxu0  ;;  %2198 = vmatmul.mubr.f32.gmra.mrb[122].mxu0 %v784_v20  ;;  %2992 = vmatmul.mubr.msk.f32.gmra.mrb[154].mxu1 %vm1246_vm1, %v776_v22  ;;  %v1711_v39 = vpop.f32.mrb[49].mxu1 }
 0x1c6   : > { %2202 = vmatprep.mubr.f32.mxu0 %v790_v28  ;;  %2994 = vmatprep.mubr.msk.f32.mxu1 %vm1246_vm1, %v781_v29  ;;  %v5131_v28 = vpop.permute.xlu0 %988 }
 0x1c7   : > { %5522 = vst [vmem:[#allocation10_spill] sm:$0xff] %v5131_v28 }
 0x1c8   : > { %v5112_v56 = vpop.f32.mrb[18].mxu0  ;;  %v5114_v61 = vpop.f32.mrb[50].mxu1 }
 0x1c9   : > { %5520 = vst [vmem:[#allocation8_spill] sm:$0xff] %v5114_v61  ;;  %v1941_v62 = vpop.f32.mrb[19].mxu0  ;;  %2203 = vmatmul.mubr.f32.gmra.mrb[124].mxu0 %v789_v45  ;;  %2995 = vmatmul.mubr.msk.f32.gmra.mrb[156].mxu1 %vm1246_vm1, %v786_v46  ;;  %v1716_v2 = vpop.f32.mrb[51].mxu1 }
 0x1ca   : > { %2207 = vmatprep.mubr.f32.mxu0 %v795_v50  ;;  %2997 = vmatprep.mubr.msk.f32.mxu1 %vm1246_vm1, %v791_v55  ;;  %v5137_v46 = vpop.permute.xlu1 %993 }
 0x1cb   : > { %5524 = vst [vmem:[#allocation12_spill] sm:$0xff] %v5137_v46 }
 0x1cc   : > { %v5126_v17 = vpop.f32.mrb[20].mxu0  ;;  %v5128_v3 = vpop.f32.mrb[52].mxu1 }
 0x1cd   : > { %5521 = vst [vmem:[#allocation9_spill] sm:$0xff] %v5128_v3  ;;  %v1946_v20 = vpop.f32.mrb[21].mxu0  ;;  %2208 = vmatmul.mubr.f32.gmra.mrb[126].mxu0 %v794_v5  ;;  %2998 = vmatmul.mubr.msk.f32.gmra.mrb[158].mxu1 %vm1246_vm1, %v796_v8  ;;  %v1721_v22 = vpop.f32.mrb[53].mxu1 }
 0x1ce   : > { %v5143_v5 = vpop.permute.xlu0 %998  ;;  %v5149_v61 = vpop.permute.xlu1 %1003 }
 0x1cf   : > { %5527 = vst [vmem:[#allocation15_spill] sm:$0xff] %v5143_v5  ;;  %5530 = vst [vmem:[#allocation18_spill] sm:$0xff] %v5149_v61 }
 0x1d0   : > { %v5133_v29 = vpop.f32.mrb[22].mxu0  ;;  %v5135_v37 = vpop.f32.mrb[54].mxu1 }
 0x1d1   : > { %5523 = vst [vmem:[#allocation11_spill] sm:$0xff] %v5135_v37  ;;  %v1951_v39 = vpop.f32.mrb[23].mxu0  ;;  %v1726_v45 = vpop.f32.mrb[55].mxu1 }
 0x1d2   : > { %v1009_v16 = vpop.permute.xlu0 %1008 }
 0x1d4   : > { %v5139_v50 = vpop.f32.mrb[24].mxu0  ;;  %v5141_v55 = vpop.f32.mrb[56].mxu1 }
 0x1d5   : > { %5525 = vst [vmem:[#allocation13_spill] sm:$0xff] %v5139_v50  ;;  %5526 = vst [vmem:[#allocation14_spill] sm:$0xff] %v5141_v55  ;;  %v1956_v62 = vpop.f32.mrb[25].mxu0  ;;  %v1731_v2 = vpop.f32.mrb[57].mxu1  ;;  %v1590_v50 = vadd.f32 %v4672_v0, %v1009_v16 }
 0x1d8   : > { %v5145_v8 = vpop.f32.mrb[26].mxu0  ;;  %v5147_v20 = vpop.f32.mrb[58].mxu1 }
 0x1d9   : > { %5528 = vst [vmem:[#allocation16_spill] sm:$0xff] %v5145_v8  ;;  %5529 = vst [vmem:[#allocation17_spill] sm:$0xff] %v5147_v20  ;;  %v1961_v22 = vpop.f32.mrb[27].mxu0  ;;  %v1736_v3 = vpop.f32.mrb[59].mxu1 }
 0x1da   : > { %v1014_v20 = vpop.permute.xlu1 %1013 }
 0x1dc   : > { %v5151_v39 = vpop.f32.mrb[28].mxu0  ;;  %v5153_v45 = vpop.f32.mrb[60].mxu1 }
 0x1dd   : > { %5531 = vst [vmem:[#allocation19_spill] sm:$0xff] %v5151_v39  ;;  %5532 = vst [vmem:[#allocation20_spill] sm:$0xff] %v5153_v45  ;;  %v1966_v37 = vpop.f32.mrb[29].mxu0  ;;  %v1741_v34 = vpop.f32.mrb[61].mxu1 }
 0x1de   : > { %v1595_v37 = vadd.f32 %v4688_v7, %v1014_v20  ;;  %v1019_v34 = vpop.permute.xlu0 %1018  ;;  %v1024_v16 = vpop.permute.xlu1 %1023 }
 0x1df   : > { %v1600_v0 = vadd.f32 %v4704_v13, %v1019_v34  ;;  %v1605_v7 = vadd.f32 %v4720_v19, %v1024_v16 }
 0x1e0   : > { %v5155_v55 = vpop.f32.mrb[30].mxu0  ;;  %v5157_v62 = vpop.f32.mrb[62].mxu1 }
 0x1e1   : > { %5533 = vst [vmem:[#allocation21_spill] sm:$0xff] %v5155_v55  ;;  %5534 = vst [vmem:[#allocation22_spill] sm:$0xff] %v5157_v62  ;;  %v1971_v2 = vpop.f32.mrb[31].mxu0  ;;  %v1746_v5 = vpop.f32.mrb[63].mxu1 }
 0x1e2   : > { %v1029_v20 = vpop.permute.xlu0 %1028  ;;  %v1034_v34 = vpop.permute.xlu1 %1033 }
 0x1e3   : > { %v1610_v13 = vadd.f32 %v4736_v24, %v1029_v20  ;;  %v1615_v19 = vadd.f32 %v4752_v30, %v1034_v34 }
 0x1e4   : > { %v1974_v22 = vpop.f32.mrb[32].mxu0  ;;  %v5160_v3 = vpop.f32.mrb[64].mxu1 }
 0x1e5   : > { %5535 = vst [vmem:[#allocation23_spill] sm:$0xff] %v5160_v3  ;;  %v5162_v61 = vadd.f32 %v1974_v22, %v1590_v50  ;;  %v1976_v39 = vpop.f32.mrb[33].mxu0  ;;  %v1751_v28 = vpop.f32.mrb[65].mxu1 }
 0x1e6   : > { %v1039_v16 = vpop.permute.xlu0 %1038  ;;  %v1044_v20 = vpop.permute.xlu1 %1043 }
 0x1e7   : > { %v1620_v24 = vadd.f32 %v4768_v36, %v1039_v16  ;;  %v1625_v30 = vadd.f32 %v4784_v42, %v1044_v20 }
 0x1e8   : > { %v1979_v45 = vpop.f32.mrb[34].mxu0  ;;  %v5165_v8 = vpop.f32.mrb[66].mxu1 }
 0x1e9   : > { %5536 = vst [vmem:[#allocation24_spill] sm:$0xff] %v5165_v8  ;;  %v5167_v55 = vadd.f32 %v1979_v45, %v1595_v37  ;;  %v1981_v2 = vpop.f32.mrb[35].mxu0  ;;  %v1756_v5 = vpop.f32.mrb[67].mxu1 }
 0x1ea   : > { %v1049_v34 = vpop.permute.xlu0 %1048  ;;  %v1054_v16 = vpop.permute.xlu1 %1053 }
 0x1eb   : > { %v1630_v36 = vadd.f32 %v4800_v48, %v1049_v34  ;;  %v1635_v42 = vadd.f32 %v4816_v54, %v1054_v16 }
 0x1ec   : > { %v1984_v62 = vpop.f32.mrb[36].mxu0  ;;  %v5170_v46 = vpop.f32.mrb[68].mxu1 }
 0x1ed   : > { %5537 = vst [vmem:[#allocation25_spill] sm:$0xff] %v5170_v46  ;;  %v5172_v50 = vadd.f32 %v1984_v62, %v1600_v0  ;;  %v1986_v39 = vpop.f32.mrb[37].mxu0  ;;  %v1761_v28 = vpop.f32.mrb[69].mxu1 }
 0x1ee   : > { %v1059_v20 = vpop.permute.xlu0 %1058  ;;  %v1064_v34 = vpop.permute.xlu1 %1063 }
 0x1ef   : > { %v1640_v48 = vadd.f32 %v4832_v60, %v1059_v20  ;;  %v1645_v54 = vadd.f32 %v4848_v4, %v1064_v34 }
 0x1f0   : > { %v1989_v22 = vpop.f32.mrb[38].mxu0  ;;  %v5175_v3 = vpop.f32.mrb[70].mxu1 }
 0x1f1   : > { %5538 = vst [vmem:[#allocation26_spill] sm:$0xff] %v5175_v3  ;;  %v5177_v45 = vadd.f32 %v1989_v22, %v1605_v7  ;;  %v1991_v37 = vpop.f32.mrb[39].mxu0  ;;  %v1766_v2 = vpop.f32.mrb[71].mxu1 }
 0x1f2   : > { %v1069_v16 = vpop.permute.xlu0 %1068  ;;  %v1074_v20 = vpop.permute.xlu1 %1073 }
 0x1f3   : > { %v1650_v60 = vadd.f32 %v4864_v11, %v1069_v16  ;;  %v1655_v4 = vadd.f32 %v4880_v18, %v1074_v20 }
 0x1f4   : > { %v1994_v5 = vpop.f32.mrb[40].mxu0  ;;  %v5180_v8 = vpop.f32.mrb[72].mxu1 }
 0x1f5   : > { %5539 = vst [vmem:[#allocation27_spill] sm:$0xff] %v5180_v8  ;;  %v5182_v62 = vadd.f32 %v1994_v5, %v1610_v13  ;;  %v1996_v0 = vpop.f32.mrb[41].mxu0  ;;  %v1771_v39 = vpop.f32.mrb[73].mxu1 }
 0x1f6   : > { %v1079_v34 = vpop.permute.xlu0 %1078  ;;  %v1084_v16 = vpop.permute.xlu1 %1083 }
 0x1f7   : > { %v1660_v11 = vadd.f32 %v4896_v25, %v1079_v34  ;;  %v1665_v18 = vadd.f32 %v4912_v32, %v1084_v16  ;;  %v3129_v34 = vadd.f32 %v4952_v52, %v4944_v49 }
 0x1f8   : > { %v1999_v28 = vpop.f32.mrb[42].mxu0  ;;  %v5185_v46 = vpop.f32.mrb[74].mxu1 }
 0x1f9   : > { %5540 = vst [vmem:[#allocation28_spill] sm:$0xff] %v5185_v46  ;;  %v5187_v7 = vadd.f32 %v1999_v28, %v1615_v19  ;;  %v2001_v22 = vpop.f32.mrb[43].mxu0  ;;  %v1776_v37 = vpop.f32.mrb[75].mxu1 }
 0x1fa   : > { %v1089_v20 = vpop.permute.xlu0 %1088 }
 0x1fb   : > { %v1670_v25 = vadd.f32 %v4934_v43, %v1089_v20  ;;  %v3131_v43 = vadd.f32 %v4992_v14, %v4964_v59 }
 0x1fc   : > { %v2004_v2 = vpop.f32.mrb[44].mxu0  ;;  %v5190_v3 = vpop.f32.mrb[76].mxu1 }
 0x1fd   : > { %5541 = vst [vmem:[#allocation29_spill] sm:$0xff] %v5190_v3  ;;  %v5192_v13 = vadd.f32 %v2004_v2, %v1620_v24  ;;  %v2006_v5 = vpop.f32.mrb[45].mxu0  ;;  %v1781_v0 = vpop.f32.mrb[77].mxu1 }
 0x200   : > { %v2009_v39 = vpop.f32.mrb[46].mxu0  ;;  %v5195_v8 = vpop.f32.mrb[78].mxu1 }
 0x201   : > { %5542 = vst [vmem:[#allocation30_spill] sm:$0xff] %v5195_v8  ;;  %v5197_v19 = vadd.f32 %v2009_v39, %v1625_v30  ;;  %v2011_v28 = vpop.f32.mrb[47].mxu0  ;;  %v1786_v22 = vpop.f32.mrb[79].mxu1 }
 0x204   : > { %v2014_v37 = vpop.f32.mrb[48].mxu0  ;;  %v5200_v46 = vpop.f32.mrb[80].mxu1 }
 0x205   : > { %5543 = vst [vmem:[#allocation31_spill] sm:$0xff] %v5200_v46  ;;  %v5202_v24 = vadd.f32 %v2014_v37, %v1630_v36  ;;  %v2016_v2 = vpop.f32.mrb[49].mxu0  ;;  %v1791_v5 = vpop.f32.mrb[81].mxu1 }
 0x208   : > { %v2019_v0 = vpop.f32.mrb[50].mxu0  ;;  %v5205_v3 = vpop.f32.mrb[82].mxu1 }
 0x209   : > { %5544 = vst [vmem:[#allocation32_spill] sm:$0xff] %v5205_v3  ;;  %v5207_v30 = vadd.f32 %v2019_v0, %v1635_v42  ;;  %v2021_v39 = vpop.f32.mrb[51].mxu0  ;;  %v1796_v28 = vpop.f32.mrb[83].mxu1 }
 0x20c   : > { %v2024_v22 = vpop.f32.mrb[52].mxu0  ;;  %v5210_v8 = vpop.f32.mrb[84].mxu1 }
 0x20d   : > { %5545 = vst [vmem:[#allocation33_spill] sm:$0xff] %v5210_v8  ;;  %v5212_v36 = vadd.f32 %v2024_v22, %v1640_v48  ;;  %v2026_v37 = vpop.f32.mrb[53].mxu0  ;;  %v1801_v2 = vpop.f32.mrb[85].mxu1 }
 0x210   : > { %v2029_v5 = vpop.f32.mrb[54].mxu0  ;;  %v5215_v46 = vpop.f32.mrb[86].mxu1 }
 0x211   : > { %5546 = vst [vmem:[#allocation34_spill] sm:$0xff] %v5215_v46  ;;  %v5217_v42 = vadd.f32 %v2029_v5, %v1645_v54  ;;  %v2031_v0 = vpop.f32.mrb[55].mxu0  ;;  %v1806_v39 = vpop.f32.mrb[87].mxu1 }
 0x214   : > { %v2034_v28 = vpop.f32.mrb[56].mxu0  ;;  %v5220_v3 = vpop.f32.mrb[88].mxu1 }
 0x215   : > { %5547 = vst [vmem:[#allocation35_spill] sm:$0xff] %v5220_v3  ;;  %v5222_v48 = vadd.f32 %v2034_v28, %v1650_v60  ;;  %v2036_v22 = vpop.f32.mrb[57].mxu0  ;;  %v1811_v37 = vpop.f32.mrb[89].mxu1 }
 0x218   : > { %v2039_v2 = vpop.f32.mrb[58].mxu0  ;;  %v5225_v46 = vpop.f32.mrb[90].mxu1 }
 0x219   : > { %v5227_v54 = vadd.f32 %v2039_v2, %v1655_v4  ;;  %v2041_v5 = vpop.f32.mrb[59].mxu0  ;;  %v1816_v0 = vpop.f32.mrb[91].mxu1 }
 0x21a   : > { %v1094_v0 = vpop.permute.xlu1 %1093 }
 0x21c   : > { %v2044_v39 = vpop.f32.mrb[60].mxu0  ;;  %v5230_v3 = vpop.f32.mrb[92].mxu1 }
 0x21d   : > { %v5232_v60 = vadd.f32 %v2044_v39, %v1660_v11  ;;  %v2046_v28 = vpop.f32.mrb[61].mxu0  ;;  %v1821_v22 = vpop.f32.mrb[93].mxu1  ;;  %v3128_v11 = vadd.f32 %v4932_v41, %v4914_v33  ;;  %v3130_v33 = vadd.f32 %v4972_v63, %v4924_v38  ;;  %v3132_v38 = vadd.f32 %v5012_v26, %v4984_v9 }
 0x21e   : > { %v1104_v14 = vpop.permute.xlu1 %1103  ;;  %v3134_v9 = vadd.f32 %v5052_v57, %v5024_v35  ;;  %v3136_v35 = vadd.f32 %v5092_v31, %v5064_v6  ;;  %v3138_v6 = vadd.f32 %v5126_v17, %v5104_v47  ;;  %v5552_v47 = vld [vmem:[#allocation13_spill] sm:$0xff] }
 0x220   : > { %v2049_v37 = vpop.f32.mrb[62].mxu0  ;;  %v5235_v8 = vpop.f32.mrb[94].mxu1 }
 0x221   : > { %5548 = vst [vmem:[#allocation36_spill] sm:$0xff] %v5235_v8  ;;  %v5238_v4 = vadd.f32 %v2049_v37, %v1665_v18  ;;  %v2051_v2 = vpop.f32.mrb[63].mxu0  ;;  %v1826_v5 = vpop.f32.mrb[95].mxu1  ;;  %v1675_v37 = vadd.f32 %v4954_v53, %v1094_v0 }
 0x222   : > { %v1099_v2 = vpop.permute.xlu0 %1098 }
 0x223   : > { %v1680_v59 = vadd.f32 %v4974_v1, %v1099_v2  ;;  %v1685_v1 = vadd.f32 %v4994_v15, %v1104_v14 }
 0x224   : > { %v2054_v39 = vpop.f32.mrb[64].mxu0  ;;  %v2906_v32 = vpop.f32.mrb[96].mxu1 }
 0x225   : > { %v5245_v16 = vadd.f32 %v2054_v39, %v1670_v25  ;;  %v2285_v28 = vadd.f32 %v3129_v34, %v2906_v32  ;;  %v2056_v22 = vpop.f32.mrb[65].mxu0  ;;  %v2279_v8 = vpop.f32.mrb[97].mxu1  ;;  %v3133_v25 = vadd.f32 %v5032_v40, %v5004_v21  ;;  %v3135_v21 = vadd.f32 %v5072_v12, %v5044_v51 }
 0x226   : > { %v2280_v18 = vadd.f32 %v3128_v11, %v2279_v8  ;;  %v1109_v22 = vpop.permute.xlu0 %1108  ;;  %v3137_v51 = vadd.f32 %v5112_v56, %v5084_v23  ;;  %v3139_v23 = vadd.f32 %v5133_v29, %v5124_v10  ;;  %v5550_v10 = vld [vmem:[#allocation16_spill] sm:$0xff] }
 0x227   : > { %2599 = vst [vmem:[%s5250_s9 + $0x8] sm:$0xff] %v2285_v28  ;;  %v1690_v15 = vadd.f32 %v5014_v27, %v1109_v22 }
 0x228   : > { %2598 = vst [vmem:[%s5250_s9] sm:$0xff] %v2280_v18  ;;  %v2059_v41 = vpop.f32.mrb[66].mxu0  ;;  %v2909_v49 = vpop.f32.mrb[98].mxu1 }
 0x229   : > { %v5256_v52 = vadd.f32 %v2059_v41, %v1675_v37  ;;  %v2295_v53 = vadd.f32 %v3131_v43, %v2909_v49  ;;  %v2061_v8 = vpop.f32.mrb[67].mxu0  ;;  %v2289_v20 = vpop.f32.mrb[99].mxu1 }
 0x22a   : > { %v2290_v5 = vadd.f32 %v3130_v33, %v2289_v20  ;;  %v1114_v41 = vpop.permute.xlu1 %1113 }
 0x22b   : > { %2601 = vst [vmem:[%s5250_s9 + $0x18] sm:$0xff] %v2295_v53  ;;  %v1695_v27 = vadd.f32 %v5034_v44, %v1114_v41  ;;  %v5556_v41 = vld [vmem:[#allocation15_spill] sm:$0xff] }
 0x22c   : > { %2600 = vst [vmem:[%s5250_s9 + $0x10] sm:$0xff] %v2290_v5  ;;  %v2064_v63 = vpop.f32.mrb[68].mxu0  ;;  %v2912_v34 = vpop.f32.mrb[100].mxu1 }
 0x22d   : > { %v5265_v0 = vadd.f32 %v2064_v63, %v1680_v59  ;;  %v2305_v11 = vadd.f32 %v3133_v25, %v2912_v34  ;;  %v2066_v39 = vpop.f32.mrb[69].mxu0  ;;  %v2299_v32 = vpop.f32.mrb[101].mxu1 }
 0x22e   : > { %v2300_v28 = vadd.f32 %v3132_v38, %v2299_v32  ;;  %v1119_v59 = vpop.permute.xlu0 %1118  ;;  %v5549_v39 = vld [vmem:[#allocation12_spill] sm:$0xff]  ;;  %v5551_v32 = vld [vmem:[#allocation10_spill] sm:$0xff] }
 0x22f   : > { %2603 = vst [vmem:[%s5250_s9 + $0x28] sm:$0xff] %v2305_v11  ;;  %v1700_v44 = vadd.f32 %v5054_v58, %v1119_v59  ;;  %v1124_v11 = vpop.permute.xlu1 %1123  ;;  %v3141_v29 = vadd.f32 %v5550_v10, %v5549_v39  ;;  %v3140_v17 = vadd.f32 %v5552_v47, %v5551_v32  ;;  %v5553_v58 = vld [vmem:[#allocation6_spill] sm:$0xff]  ;;  %v5558_v59 = vld [vmem:[#allocation7_spill] sm:$0xff] }
 0x230   : > { %2602 = vst [vmem:[%s5250_s9 + $0x20] sm:$0xff] %v2300_v28  ;;  %v2069_v26 = vpop.f32.mrb[70].mxu0  ;;  %v2915_v40 = vpop.f32.mrb[102].mxu1 }
 0x231   : > { %v5274_v18 = vadd.f32 %v2069_v26, %v1685_v1  ;;  %v2315_v37 = vadd.f32 %v3135_v21, %v2915_v40  ;;  %v2071_v2 = vpop.f32.mrb[71].mxu0  ;;  %v2309_v43 = vpop.f32.mrb[103].mxu1 }
 0x232   : > { %v2310_v33 = vadd.f32 %v3134_v9, %v2309_v43  ;;  %v1129_v2 = vpop.permute.xlu0 %1128  ;;  %v5554_v43 = vld [vmem:[#allocation18_spill] sm:$0xff] }
 0x233   : > { %2605 = vst [vmem:[%s5250_s9 + $0x38] sm:$0xff] %v2315_v37  ;;  %v1705_v37 = vadd.f32 %v5553_v58, %v1124_v11  ;;  %v5559_v11 = vld [vmem:[#allocation8_spill] sm:$0xff] }
 0x234   : > { %2604 = vst [vmem:[%s5250_s9 + $0x30] sm:$0xff] %v2310_v33  ;;  %v2074_v57 = vpop.f32.mrb[72].mxu0  ;;  %v2918_v12 = vpop.f32.mrb[104].mxu1  ;;  %v5555_v33 = vld [vmem:[#allocation21_spill] sm:$0xff] }
 0x235   : > { %v5283_v49 = vadd.f32 %v2074_v57, %v1690_v15  ;;  %v2325_v53 = vadd.f32 %v3137_v51, %v2918_v12  ;;  %v2076_v8 = vpop.f32.mrb[73].mxu0  ;;  %v2319_v20 = vpop.f32.mrb[105].mxu1  ;;  %v3143_v15 = vadd.f32 %v5555_v33, %v5554_v43  ;;  %v5557_v51 = vld [vmem:[#allocation19_spill] sm:$0xff] }
 0x236   : > { %v2320_v5 = vadd.f32 %v3136_v35, %v2319_v20  ;;  %v3142_v35 = vadd.f32 %v5557_v51, %v5556_v41  ;;  %v1139_v10 = vpop.permute.xlu0 %1138  ;;  %v5561_v33 = vld [vmem:[#allocation11_spill] sm:$0xff] }
 0x237   : > { %2607 = vst [vmem:[%s5250_s9 + $0x48] sm:$0xff] %v2325_v53 }
 0x238   : > { %2606 = vst [vmem:[%s5250_s9 + $0x40] sm:$0xff] %v2320_v5  ;;  %v2079_v31 = vpop.f32.mrb[74].mxu0  ;;  %v2921_v56 = vpop.f32.mrb[106].mxu1 }
 0x239   : > { %v5292_v14 = vadd.f32 %v2079_v31, %v1695_v27  ;;  %v2335_v25 = vadd.f32 %v3139_v23, %v2921_v56  ;;  %v2081_v38 = vpop.f32.mrb[75].mxu0  ;;  %v2329_v63 = vpop.f32.mrb[107].mxu1  ;;  %v1710_v23 = vadd.f32 %v5558_v59, %v1129_v2 }
 0x23a   : > { %v2330_v34 = vadd.f32 %v3138_v6, %v2329_v63  ;;  %v1134_v6 = vpop.permute.xlu1 %1133 }
 0x23b   : > { %2609 = vst [vmem:[%s5250_s9 + $0x58] sm:$0xff] %v2335_v25  ;;  %v1715_v39 = vadd.f32 %v5559_v11, %v1134_v6 }
 0x23c   : > { %2608 = vst [vmem:[%s5250_s9 + $0x50] sm:$0xff] %v2330_v34  ;;  %v2084_v28 = vpop.f32.mrb[76].mxu0  ;;  %v2924_v1 = vpop.f32.mrb[108].mxu1 }
 0x23d   : > { %v5301_v22 = vadd.f32 %v2084_v28, %v1700_v44  ;;  %v2345_v21 = vadd.f32 %v3141_v29, %v2924_v1  ;;  %v2086_v9 = vpop.f32.mrb[77].mxu0  ;;  %v2339_v26 = vpop.f32.mrb[109].mxu1 }
 0x23e   : > { %v2340_v40 = vadd.f32 %v3140_v17, %v2339_v26 }
 0x23f   : > { %2611 = vst [vmem:[%s5250_s9 + $0x68] sm:$0xff] %v2345_v21  ;;  %v5560_v21 = vld [vmem:[#allocation9_spill] sm:$0xff] }
 0x240   : > { %2610 = vst [vmem:[%s5250_s9 + $0x60] sm:$0xff] %v2340_v40  ;;  %v2089_v57 = vpop.f32.mrb[78].mxu0  ;;  %v2927_v12 = vpop.f32.mrb[110].mxu1  ;;  %v1720_v9 = vadd.f32 %v5560_v21, %v1139_v10 }
 0x241   : > { %v5310_v53 = vadd.f32 %v2089_v57, %v1705_v37  ;;  %v2355_v8 = vadd.f32 %v3143_v15, %v2927_v12  ;;  %v2091_v20 = vpop.f32.mrb[79].mxu0  ;;  %v2349_v5 = vpop.f32.mrb[111].mxu1 }
 0x242   : > { %v2350_v27 = vadd.f32 %v3142_v35, %v2349_v5  ;;  %v5562_v20 = vld [vmem:[#allocation14_spill] sm:$0xff] }
 0x243   : > { %2613 = vst [vmem:[%s5250_s9 + $0x78] sm:$0xff] %v2355_v8 }
 0x244   : > { %2612 = vst [vmem:[%s5250_s9 + $0x70] sm:$0xff] %v2350_v27  ;;  %v2094_v31 = vpop.f32.mrb[80].mxu0  ;;  %v2930_v56 = vpop.f32.mrb[112].mxu1 }
 0x245   : > { %v5315_v25 = vadd.f32 %v2094_v31, %v1710_v23  ;;  %v2365_v38 = vadd.f32 %v2930_v56, %v5167_v55  ;;  %v2096_v63 = vpop.f32.mrb[81].mxu0  ;;  %v2359_v34 = vpop.f32.mrb[113].mxu1 }
 0x246   : > { %v2360_v44 = vadd.f32 %v2359_v34, %v5162_v61  ;;  %v1144_v61 = vpop.permute.xlu1 %1143 }
 0x247   : > { %2615 = vst [vmem:[%s5250_s9 + $0x88] sm:$0xff] %v2365_v38  ;;  %v1725_v15 = vadd.f32 %v5561_v33, %v1144_v61  ;;  %v5563_v38 = vld [vmem:[#allocation17_spill] sm:$0xff] }
 0x248   : > { %2614 = vst [vmem:[%s5250_s9 + $0x80] sm:$0xff] %v2360_v44  ;;  %v2099_v29 = vpop.f32.mrb[82].mxu0  ;;  %v2933_v32 = vpop.f32.mrb[114].mxu1 }
 0x249   : > { %v5322_v47 = vadd.f32 %v2099_v29, %v1715_v39  ;;  %v2375_v17 = vadd.f32 %v2933_v32, %v5177_v45  ;;  %v2101_v28 = vpop.f32.mrb[83].mxu0  ;;  %v2369_v55 = vpop.f32.mrb[115].mxu1  ;;  %v5564_v32 = vld [vmem:[#allocation20_spill] sm:$0xff] }
 0x24a   : > { %v2370_v1 = vadd.f32 %v2369_v55, %v5172_v50  ;;  %v1149_v50 = vpop.permute.xlu0 %1148 }
 0x24b   : > { %2617 = vst [vmem:[%s5250_s9 + $0x98] sm:$0xff] %v2375_v17  ;;  %v1730_v5 = vadd.f32 %v5562_v20, %v1149_v50  ;;  %v5566_v50 = vld [vmem:[#allocation23_spill] sm:$0xff] }
 0x24c   : > { %2616 = vst [vmem:[%s5250_s9 + $0x90] sm:$0xff] %v2370_v1  ;;  %v2104_v26 = vpop.f32.mrb[84].mxu0  ;;  %v2936_v40 = vpop.f32.mrb[116].mxu1 }
 0x24d   : > { %v5329_v58 = vadd.f32 %v2104_v26, %v1720_v9  ;;  %v2385_v37 = vadd.f32 %v2936_v40, %v5187_v7  ;;  %v2106_v2 = vpop.f32.mrb[85].mxu0  ;;  %v2379_v45 = vpop.f32.mrb[117].mxu1  ;;  %v5565_v26 = vld [vmem:[#allocation22_spill] sm:$0xff] }
 0x24e   : > { %v2380_v43 = vadd.f32 %v2379_v45, %v5182_v62  ;;  %v1154_v62 = vpop.permute.xlu1 %1153 }
 0x24f   : > { %2619 = vst [vmem:[%s5250_s9 + $0xa8] sm:$0xff] %v2385_v37  ;;  %v1735_v63 = vadd.f32 %v5563_v38, %v1154_v62  ;;  %v5568_v38 = vld [vmem:[#allocation25_spill] sm:$0xff] }
 0x250   : > { %2618 = vst [vmem:[%s5250_s9 + $0xa0] sm:$0xff] %v2380_v43  ;;  %v2109_v41 = vpop.f32.mrb[86].mxu0  ;;  %v2939_v51 = vpop.f32.mrb[118].mxu1 }
 0x251   : > { %v5336_v35 = vadd.f32 %v2109_v41, %v1725_v15  ;;  %v2395_v57 = vadd.f32 %v2939_v51, %v5197_v19  ;;  %v2111_v12 = vpop.f32.mrb[87].mxu0  ;;  %v2389_v7 = vpop.f32.mrb[119].mxu1 }
 0x252   : > { %v2390_v8 = vadd.f32 %v2389_v7, %v5192_v13  ;;  %v1159_v13 = vpop.permute.xlu0 %1158 }
 0x253   : > { %2621 = vst [vmem:[%s5250_s9 + $0xb8] sm:$0xff] %v2395_v57  ;;  %v1740_v17 = vadd.f32 %v5564_v32, %v1159_v13 }
 0x254   : > { %2620 = vst [vmem:[%s5250_s9 + $0xb0] sm:$0xff] %v2390_v8  ;;  %v2114_v27 = vpop.f32.mrb[88].mxu0  ;;  %v2942_v59 = vpop.f32.mrb[120].mxu1 }
 0x255   : > { %v5343_v23 = vadd.f32 %v2114_v27, %v1730_v5  ;;  %v2405_v6 = vadd.f32 %v2942_v59, %v5207_v30  ;;  %v2116_v31 = vpop.f32.mrb[89].mxu0  ;;  %v2399_v19 = vpop.f32.mrb[121].mxu1  ;;  %v5567_v5 = vld [vmem:[#allocation24_spill] sm:$0xff] }
 0x256   : > { %v2400_v56 = vadd.f32 %v2399_v19, %v5202_v24  ;;  %v1164_v24 = vpop.permute.xlu1 %1163 }
 0x257   : > { %2623 = vst [vmem:[%s5250_s9 + $0xc8] sm:$0xff] %v2405_v6  ;;  %v1745_v40 = vadd.f32 %v5565_v26, %v1164_v24 }
 0x258   : > { %2622 = vst [vmem:[%s5250_s9 + $0xc0] sm:$0xff] %v2400_v56  ;;  %v2119_v34 = vpop.f32.mrb[90].mxu0  ;;  %v2945_v44 = vpop.f32.mrb[122].mxu1 }
 0x259   : > { %v5350_v11 = vadd.f32 %v2119_v34, %v1735_v63  ;;  %v2415_v39 = vadd.f32 %v2945_v44, %v5217_v42  ;;  %v2121_v10 = vpop.f32.mrb[91].mxu0  ;;  %v2409_v30 = vpop.f32.mrb[123].mxu1 }
 0x25a   : > { %v2410_v29 = vadd.f32 %v2409_v30, %v5212_v36  ;;  %v1169_v36 = vpop.permute.xlu0 %1168 }
 0x25b   : > { %2625 = vst [vmem:[%s5250_s9 + $0xd8] sm:$0xff] %v2415_v39  ;;  %v1750_v41 = vadd.f32 %v5566_v50, %v1169_v36 }
 0x25c   : > { %2624 = vst [vmem:[%s5250_s9 + $0xd0] sm:$0xff] %v2410_v29  ;;  %v2124_v28 = vpop.f32.mrb[92].mxu0  ;;  %v2948_v55 = vpop.f32.mrb[124].mxu1  ;;  %v5569_v29 = vld [vmem:[#allocation26_spill] sm:$0xff] }
 0x25d   : > { %v5357_v1 = vadd.f32 %v2124_v28, %v1740_v17  ;;  %v2425_v21 = vadd.f32 %v2948_v55, %v5227_v54  ;;  %v2126_v9 = vpop.f32.mrb[93].mxu0  ;;  %v2419_v42 = vpop.f32.mrb[125].mxu1 }
 0x25e   : > { %v2420_v61 = vadd.f32 %v2419_v42, %v5222_v48  ;;  %v1174_v48 = vpop.permute.xlu1 %1173  ;;  %v5570_v42 = vld [vmem:[#allocation27_spill] sm:$0xff] }
 0x25f   : > { %2627 = vst [vmem:[%s5250_s9 + $0xe8] sm:$0xff] %v2425_v21  ;;  %v1755_v62 = vadd.f32 %v5567_v5, %v1174_v48 }
 0x260   : > { %2626 = vst [vmem:[%s5250_s9 + $0xe0] sm:$0xff] %v2420_v61  ;;  %v2129_v37 = vpop.f32.mrb[94].mxu0  ;;  %v2951_v2 = vpop.f32.mrb[126].mxu1 }
 0x261   : > { %v5364_v45 = vadd.f32 %v2129_v37, %v1745_v40  ;;  %v2435_v43 = vadd.f32 %v2951_v2, %v5238_v4  ;;  %v2131_v33 = vpop.f32.mrb[95].mxu0  ;;  %v2429_v54 = vpop.f32.mrb[127].mxu1 }
 0x262   : > { %v2430_v15 = vadd.f32 %v2429_v54, %v5232_v60  ;;  %v1179_v60 = vpop.permute.xlu0 %1178  ;;  %v5571_v33 = vld [vmem:[#allocation28_spill] sm:$0xff] }
 0x263   : > { %2629 = vst [vmem:[%s5250_s9 + $0xf8] sm:$0xff] %v2435_v43  ;;  %v1760_v63 = vadd.f32 %v5568_v38, %v1179_v60 }
 0x264   : > { %2628 = vst [vmem:[%s5250_s9 + $0xf0] sm:$0xff] %v2430_v15  ;;  %v2134_v51 = vpop.f32.mrb[96].mxu0  ;;  %v2954_v57 = vpop.f32.mrb[128].mxu1 }
 0x265   : > { %v5371_v12 = vadd.f32 %v2134_v51, %v1750_v41  ;;  %v2445_v7 = vadd.f32 %v2954_v57, %v5256_v52  ;;  %v2136_v8 = vpop.f32.mrb[97].mxu0  ;;  %v2439_v4 = vpop.f32.mrb[129].mxu1 }
 0x266   : > { %v2440_v20 = vadd.f32 %v2439_v4, %v5245_v16  ;;  %v1184_v16 = vpop.permute.xlu1 %1183 }
 0x267   : > { %2631 = vst [vmem:[%s5250_s9 + $0x108] sm:$0xff] %v2445_v7  ;;  %v1765_v32 = vadd.f32 %v5569_v29, %v1184_v16  ;;  %v5572_v7 = vld [vmem:[#allocation29_spill] sm:$0xff] }
 0x268   : > { %2630 = vst [vmem:[%s5250_s9 + $0x100] sm:$0xff] %v2440_v20  ;;  %v2139_v27 = vpop.f32.mrb[98].mxu0  ;;  %v2957_v59 = vpop.f32.mrb[130].mxu1 }
 0x269   : > { %v5378_v6 = vadd.f32 %v2139_v27, %v1755_v62  ;;  %v2455_v31 = vadd.f32 %v2957_v59, %v5274_v18  ;;  %v2141_v19 = vpop.f32.mrb[99].mxu0  ;;  %v2449_v52 = vpop.f32.mrb[131].mxu1  ;;  %v5573_v59 = vld [vmem:[#allocation30_spill] sm:$0xff] }
 0x26a   : > { %v2450_v56 = vadd.f32 %v2449_v52, %v5265_v0  ;;  %v1189_v0 = vpop.permute.xlu0 %1188 }
 0x26b   : > { %2633 = vst [vmem:[%s5250_s9 + $0x118] sm:$0xff] %v2455_v31  ;;  %v1770_v61 = vadd.f32 %v5570_v42, %v1189_v0  ;;  %v5575_v0 = vld [vmem:[#allocation32_spill] sm:$0xff] }
 0x26c   : > { %2632 = vst [vmem:[%s5250_s9 + $0x110] sm:$0xff] %v2450_v56  ;;  %v2144_v13 = vpop.f32.mrb[100].mxu0  ;;  %v2960_v34 = vpop.f32.mrb[132].mxu1 }
 0x26d   : > { %v5385_v44 = vadd.f32 %v2144_v13, %v1760_v63  ;;  %v2465_v39 = vadd.f32 %v2960_v34, %v5292_v14  ;;  %v2146_v10 = vpop.f32.mrb[101].mxu0  ;;  %v2459_v18 = vpop.f32.mrb[133].mxu1  ;;  %v5574_v13 = vld [vmem:[#allocation31_spill] sm:$0xff] }
 0x26e   : > { %v2460_v30 = vadd.f32 %v2459_v18, %v5283_v49  ;;  %v1194_v49 = vpop.permute.xlu1 %1193 }
 0x26f   : > { %2635 = vst [vmem:[%s5250_s9 + $0x128] sm:$0xff] %v2465_v39  ;;  %v1775_v54 = vadd.f32 %v5571_v33, %v1194_v49  ;;  %v5577_v33 = vld [vmem:[#allocation34_spill] sm:$0xff] }
 0x270   : > { %2634 = vst [vmem:[%s5250_s9 + $0x120] sm:$0xff] %v2460_v30  ;;  %v2149_v17 = vpop.f32.mrb[102].mxu0  ;;  %v2963_v24 = vpop.f32.mrb[134].mxu1 }
 0x271   : > { %v5392_v28 = vadd.f32 %v2149_v17, %v1765_v32  ;;  %v2475_v55 = vadd.f32 %v2963_v24, %v5310_v53  ;;  %v2151_v21 = vpop.f32.mrb[103].mxu0  ;;  %v2469_v14 = vpop.f32.mrb[135].mxu1 }
 0x272   : > { %v2470_v9 = vadd.f32 %v2469_v14, %v5301_v22  ;;  %v1199_v22 = vpop.permute.xlu0 %1198  ;;  %v1204_v4 = vpop.permute.xlu1 %1203 }
 0x273   : > { %2637 = vst [vmem:[%s5250_s9 + $0x138] sm:$0xff] %v2475_v55  ;;  %v1780_v8 = vadd.f32 %v5572_v7, %v1199_v22  ;;  %v1785_v31 = vadd.f32 %v5573_v59, %v1204_v4 }
 0x274   : > { %2636 = vst [vmem:[%s5250_s9 + $0x130] sm:$0xff] %v2470_v9  ;;  %v2154_v26 = vpop.f32.mrb[104].mxu0  ;;  %v2966_v40 = vpop.f32.mrb[136].mxu1 }
 0x275   : > { %v5399_v36 = vadd.f32 %v2154_v26, %v1770_v61  ;;  %v2485_v37 = vadd.f32 %v2966_v40, %v5322_v47  ;;  %v2156_v2 = vpop.f32.mrb[105].mxu0  ;;  %v2479_v53 = vpop.f32.mrb[137].mxu1  ;;  %v5576_v61 = vld [vmem:[#allocation33_spill] sm:$0xff] }
 0x276   : > { %v2480_v43 = vadd.f32 %v2479_v53, %v5315_v25  ;;  %v1209_v19 = vpop.permute.xlu0 %1208  ;;  %v1214_v39 = vpop.permute.xlu1 %1213 }
 0x277   : > { %2639 = vst [vmem:[%s5250_s9 + $0x148] sm:$0xff] %v2485_v37  ;;  %v1790_v34 = vadd.f32 %v5574_v13, %v1209_v19  ;;  %v1795_v17 = vadd.f32 %v5575_v0, %v1214_v39 }
 0x278   : > { %2638 = vst [vmem:[%s5250_s9 + $0x140] sm:$0xff] %v2480_v43  ;;  %v2159_v15 = vpop.f32.mrb[106].mxu0  ;;  %v2969_v50 = vpop.f32.mrb[138].mxu1 }
 0x279   : > { %v2160_v41 = vadd.f32 %v2159_v15, %v1775_v54  ;;  %v2495_v48 = vadd.f32 %v2969_v50, %v5336_v35  ;;  %v2161_v51 = vpop.f32.mrb[107].mxu0  ;;  %v2489_v57 = vpop.f32.mrb[139].mxu1 }
 0x27a   : > { %v2490_v47 = vadd.f32 %v2489_v57, %v5329_v58  ;;  %v1219_v24 = vpop.permute.xlu0 %1218  ;;  %v1224_v26 = vpop.permute.xlu1 %1223 }
 0x27b   : > { %2641 = vst [vmem:[%s5250_s9 + $0x158] sm:$0xff] %v2495_v48  ;;  %v1800_v49 = vadd.f32 %v5576_v61, %v1219_v24  ;;  %v1805_v54 = vadd.f32 %v5577_v33, %v1224_v26 }
 0x27c   : > { %2640 = vst [vmem:[%s5250_s9 + $0x150] sm:$0xff] %v2490_v47  ;;  %v2164_v25 = vpop.f32.mrb[108].mxu0  ;;  %v2972_v20 = vpop.f32.mrb[140].mxu1  ;;  %v5578_v47 = vld [vmem:[#allocation35_spill] sm:$0xff] }
 0x27d   : > { %v2165_v5 = vadd.f32 %v2164_v25, %v1780_v8  ;;  %v2505_v62 = vadd.f32 %v2972_v20, %v5350_v11  ;;  %v2166_v60 = vpop.f32.mrb[109].mxu0  ;;  %v2499_v27 = vpop.f32.mrb[141].mxu1 }
 0x27e   : > { %v2500_v35 = vadd.f32 %v2499_v27, %v5343_v23  ;;  %v1229_v22 = vpop.permute.xlu0 %1228  ;;  %v1234_v8 = vpop.permute.xlu1 %1233 }
 0x27f   : > { %2643 = vst [vmem:[%s5250_s9 + $0x168] sm:$0xff] %v2505_v62  ;;  %v1810_v7 = vadd.f32 %v5578_v47, %v1229_v22 }
 0x280   : > { %2642 = vst [vmem:[%s5250_s9 + $0x160] sm:$0xff] %v2500_v35  ;;  %v2169_v58 = vpop.f32.mrb[110].mxu0  ;;  %v2975_v52 = vpop.f32.mrb[142].mxu1  ;;  %v1815_v35 = vadd.f32 %v5225_v46, %v1234_v8 }
 0x281   : > { %v2170_v56 = vadd.f32 %v2169_v58, %v1785_v31  ;;  %v2515_v38 = vadd.f32 %v2975_v52, %v5364_v45  ;;  %v2171_v63 = vpop.f32.mrb[111].mxu0  ;;  %v2509_v16 = vpop.f32.mrb[143].mxu1 }
 0x282   : > { %v2510_v11 = vadd.f32 %v2509_v16, %v5357_v1  ;;  %v1239_v59 = vpop.permute.xlu0 %1238  ;;  %v1244_v16 = vpop.permute.xlu1 %1243 }
 0x283   : > { %2645 = vst [vmem:[%s5250_s9 + $0x178] sm:$0xff] %v2515_v38  ;;  %v1820_v63 = vadd.f32 %v5230_v3, %v1239_v59 }
 0x284   : > { %2644 = vst [vmem:[%s5250_s9 + $0x170] sm:$0xff] %v2510_v11  ;;  %v2174_v23 = vpop.f32.mrb[112].mxu0  ;;  %v2978_v10 = vpop.f32.mrb[144].mxu1 }
 0x285   : > { %v2175_v18 = vadd.f32 %v2174_v23, %v1790_v34  ;;  %v2525_v30 = vadd.f32 %v2978_v10, %v5378_v6  ;;  %v2176_v29 = vpop.f32.mrb[113].mxu0  ;;  %v2519_v32 = vpop.f32.mrb[145].mxu1 }
 0x286   : > { %v2520_v45 = vadd.f32 %v2519_v32, %v5371_v12 }
 0x287   : > { %2647 = vst [vmem:[%s5250_s9 + $0x188] sm:$0xff] %v2525_v30 }
 0x288   : > { %2646 = vst [vmem:[%s5250_s9 + $0x180] sm:$0xff] %v2520_v45  ;;  %v2179_v1 = vpop.f32.mrb[114].mxu0  ;;  %v2981_v55 = vpop.f32.mrb[146].mxu1 }
 0x289   : > { %v2180_v21 = vadd.f32 %v2179_v1, %v1795_v17  ;;  %v2535_v14 = vadd.f32 %v2981_v55, %v5392_v28  ;;  %v2181_v9 = vpop.f32.mrb[115].mxu0  ;;  %v2529_v42 = vpop.f32.mrb[147].mxu1 }
 0x28a   : > { %v2530_v6 = vadd.f32 %v2529_v42, %v5385_v44 }
 0x28b   : > { %2649 = vst [vmem:[%s5250_s9 + $0x198] sm:$0xff] %v2535_v14 }
 0x28c   : > { %2648 = vst [vmem:[%s5250_s9 + $0x190] sm:$0xff] %v2530_v6  ;;  %v2184_v12 = vpop.f32.mrb[116].mxu0  ;;  %v2984_v40 = vpop.f32.mrb[148].mxu1 }
 0x28d   : > { %v2185_v37 = vadd.f32 %v2184_v12, %v1800_v49  ;;  %v2545_v2 = vadd.f32 %v2984_v40, %v2160_v41  ;;  %v2186_v53 = vpop.f32.mrb[117].mxu0  ;;  %v2539_v43 = vpop.f32.mrb[149].mxu1 }
 0x28e   : > { %v2540_v28 = vadd.f32 %v2539_v43, %v5399_v36 }
 0x28f   : > { %2651 = vst [vmem:[%s5250_s9 + $0x1a8] sm:$0xff] %v2545_v2 }
 0x290   : > { %2650 = vst [vmem:[%s5250_s9 + $0x1a0] sm:$0xff] %v2540_v28  ;;  %v2189_v44 = vpop.f32.mrb[118].mxu0  ;;  %v2987_v15 = vpop.f32.mrb[150].mxu1 }
 0x291   : > { %v2190_v50 = vadd.f32 %v2189_v44, %v1805_v54  ;;  %v2555_v48 = vadd.f32 %v2987_v15, %v2170_v56  ;;  %v2191_v51 = vpop.f32.mrb[119].mxu0  ;;  %v2549_v57 = vpop.f32.mrb[151].mxu1 }
 0x292   : > { %v2550_v41 = vadd.f32 %v2549_v57, %v2165_v5 }
 0x293   : > { %2653 = vst [vmem:[%s5250_s9 + $0x1b8] sm:$0xff] %v2555_v48 }
 0x294   : > { %2652 = vst [vmem:[%s5250_s9 + $0x1b0] sm:$0xff] %v2550_v41  ;;  %v2194_v36 = vpop.f32.mrb[120].mxu0  ;;  %v2990_v4 = vpop.f32.mrb[152].mxu1 }
 0x295   : > { %v2195_v25 = vadd.f32 %v2194_v36, %v1810_v7  ;;  %v2565_v20 = vadd.f32 %v2990_v4, %v2180_v21  ;;  %v2196_v62 = vpop.f32.mrb[121].mxu0  ;;  %v2559_v60 = vpop.f32.mrb[153].mxu1 }
 0x296   : > { %v2560_v27 = vadd.f32 %v2559_v60, %v2175_v18  ;;  %v5579_v18 = vld [vmem:[#allocation36_spill] sm:$0xff] }
 0x297   : > { %2655 = vst [vmem:[%s5250_s9 + $0x1c8] sm:$0xff] %v2565_v20  ;;  %v1825_v30 = vadd.f32 %v5579_v18, %v1244_v16 }
 0x298   : > { %2654 = vst [vmem:[%s5250_s9 + $0x1c0] sm:$0xff] %v2560_v27  ;;  %v2199_v5 = vpop.f32.mrb[122].mxu0  ;;  %v2993_v31 = vpop.f32.mrb[154].mxu1 }
 0x299   : > { %v2200_v19 = vadd.f32 %v2199_v5, %v1815_v35  ;;  %v2575_v58 = vadd.f32 %v2993_v31, %v2190_v50  ;;  %v2201_v52 = vpop.f32.mrb[123].mxu0  ;;  %v2569_v56 = vpop.f32.mrb[155].mxu1 }
 0x29a   : > { %v2570_v38 = vadd.f32 %v2569_v56, %v2185_v37 }
 0x29b   : > { %2657 = vst [vmem:[%s5250_s9 + $0x1d8] sm:$0xff] %v2575_v58 }
 0x29c   : > { %2656 = vst [vmem:[%s5250_s9 + $0x1d0] sm:$0xff] %v2570_v38  ;;  %v2204_v46 = vpop.f32.mrb[124].mxu0  ;;  %v2996_v11 = vpop.f32.mrb[156].mxu1 }
 0x29d   : > { %v2205_v13 = vadd.f32 %v2204_v46, %v1820_v63  ;;  %v2585_v34 = vadd.f32 %v2996_v11, %v2200_v19  ;;  %v2206_v39 = vpop.f32.mrb[125].mxu0  ;;  %v2579_v23 = vpop.f32.mrb[157].mxu1 }
 0x29e   : > { %v2580_v10 = vadd.f32 %v2579_v23, %v2195_v25 }
 0x29f   : > { %2659 = vst [vmem:[%s5250_s9 + $0x1e8] sm:$0xff] %v2585_v34 }
 0x2a0   : > { %2658 = vst [vmem:[%s5250_s9 + $0x1e0] sm:$0xff] %v2580_v10  ;;  %v2209_v3 = vpop.f32.mrb[126].mxu0  ;;  %v2999_v29 = vpop.f32.mrb[158].mxu1 }
 0x2a1   : > { %v2210_v32 = vadd.f32 %v2209_v3, %v1825_v30  ;;  %v2211_v45 = vpop.f32.mrb[127].mxu0  ;;  %v2589_v0 = vpop.f32.mrb[159].mxu1 }
 0x2a2   : > { %v2590_v17 = vadd.f32 %v2589_v0, %v2205_v13 }
 0x2a3   : > { %v2595_v24 = vadd.f32 %v2999_v29, %v2210_v32 }
 0x2a4   : > { %2660 = vst [vmem:[%s5250_s9 + $0x1f0] sm:$0xff] %v2590_v17 }
 0x2a5   : > { %2661 = vst [vmem:[%s5250_s9 + $0x1f8] sm:$0xff] %v2595_v24 }
 0x2a6   : > { %3366 = shalt.err (!%p3363_p7)
}
 0x2a7   : > { %s3367_s7 = scalar_lea.hbm %s5453_s21, 8192  ;;  %s3371_s10 = scalar_lea.hbm %s5514_s3, 32768 }
 0x2a8   : > { %p3368_p10 = scmp.ne.s32.totalorder %s5453_s21, %s3367_s7  ;;  %p3372_p13 = scmp.lt.u32.totalorder %s5453_s21, %s5514_s3 }
 0x2a9   : > { %p3373_p0 = scmp.lt.u32.totalorder %s3371_s10, %s3367_s7  ;;  %p3375_p2 = scmp.lt.u32.totalorder %s3367_s7, %s5453_s21 }
 0x2aa   : > { %p3369_p11 = pnand %p3368_p10, %p3535_p8 }
 0x2ab   : > { %p3374_p1 = por %p3373_p0, %p3372_p13 }
 0x2ac   : > { %p3370_p12 = pneg %p3369_p11 }
 0x2ad   : > { %p3376_p3 = por %p3375_p2, %p3374_p1 }
 0x2af   : > { %p3377_p4 = pnand %p3376_p3, %p3370_p12 }
 0x2b1   : > { %3380 = shalt.err (!%p3377_p4)
}
 0x2b2   : > { %s3452_s15 = smov 128   ;;  %s3453_s20 = smov 256  }
 0x2b3   : > { %s3454_s28 = smov 8  }
 0x2b4   : > { %3275 = dma.vmem_to_hbm [thread:$0]  (%p3535_p8), %s5455_s11, 8192, %s5453_s21, %s2663_s25, %s3452_s15, %s3453_s20, %s3454_s28  }
 0x2b5 PF: > { %p3281_p5 = scmp.ge.s32.totalorder %s3447_s19, 2  ;;  %s2692_s29 = sand.u32 1, %s3419_s12  }
 0x2b6   : > { %s2693_s30 = scalar_lea.sflag [#allocation4], %s2692_s29 }
 0x2b7   : > { %p3278_p6 = pnand %p3281_p5, %p3539_p9 }
 0x2b9   : > { %3414 = dma.done.wait (!%p3278_p6), %s2693_s30, 8192  }
 0x2ba   : > { %3416 = vsyncadd (!%p3278_p6), %s2693_s30, 4294959104  ;;  %s16_s19 = sadd.s32 1, %s3447_s19   ;;  %s5580_s12 = smov %s3423_s13 }
 0x2bb   : > { %p13_p7 = scmp.ge.s32.totalorder %s16_s19, 6   ;;  %s5581_s13 = smov %s3427_s14 }
 0x2bc   : > { %s5582_s14 = smov %s3547_s4  ;;  %s5583_s15 = smov %s3439_s17 }
 0x2bd   : > { %s5584_s16 = smov %s3443_s18  ;;  %s5585_s17 = smov %s5588_s22 }
 0x2be   : > { %s5586_s18 = smov %s5592_s23  ;;  %15 = sbr.rel (!%p13_p7) target bundleno = 5 (0x5), region = 110 }
 0x2c5   :  { %2698 = vsyncpa [#allocation4], 1 }
 0x2c6   :  { %2700 = vsyncpa [#allocation4 + $0x1], 1 }

</bundles_post_ra>
